<compile_context>
chip_gen: v7x
topology: tpu7x:2x2x1
jax: 0.10.0
libtpu: 0.0.40
codegen_flags: <defaults>
</compile_context>

<pallas_src>
import functools

import jax
import jax.numpy as jnp
from jax.experimental import pallas as pl
from jax.experimental.pallas import tpu as pltpu


def _cam_logits_kernel(x_ref, w_ref, out_ref, *, inv_hw):
    """One grid step == `bt` images.

    x_ref:   (bt, C, HW)  channel-major image features (HW on lanes)
    w_ref:   (C, NC)      pre-transposed 1x1 conv weight (f32, resident)
    out_ref: (1, bt, NC)  output logits for these images (f32)
    """
    x = x_ref[...]
    hw = x.shape[-1]

    # Two-stage pool over the lane (HW) axis:
    #   1) fold 128-lane-aligned chunks with VPU adds (f32 accumulation),
    #   2) one 128-lane cross-lane reduce.
    if hw % 128 == 0 and hw > 128:
        acc = x[:, :, 0:128].astype(jnp.float32)
        for c in range(1, hw // 128):
            acc = acc + x[:, :, c * 128:(c + 1) * 128].astype(jnp.float32)
    else:
        acc = x.astype(jnp.float32)
    pooled = jnp.sum(acc, axis=-1) * inv_hw                    # (bt, C)

    # 1x1 conv on pooled features: one tiny MXU matmul (bt, C) @ (C, NC).
    out_ref[0] = jnp.dot(pooled, w_ref[...],
                         preferred_element_type=jnp.float32
                         ).astype(out_ref.dtype)


def _chip_params():
    """(vmem budget for the double-buffered x block, #TensorCores, physical VMEM)."""
    vmem_physical = 128 * 1024 * 1024
    num_tc = 1
    try:
        info = pltpu.get_tpu_info()
        vmem_physical = int(getattr(info, "vmem_capacity_bytes", vmem_physical))
    except Exception:
        pass
    try:
        kind = jax.devices()[0].device_kind.lower()
        if "v7" in kind:                       # 2 TCs / chip, 64 MiB VMEM / TC
            num_tc = 2
            vmem_physical = min(vmem_physical, 64 * 1024 * 1024)
    except Exception:
        pass
    budget = min(vmem_physical // 3, 48 * 1024 * 1024)
    return budget, num_tc, vmem_physical


def _pick_images_per_step(batch, bytes_per_image, budget, num_tc):
    """Largest bt whose double-buffered x block fits the budget.  On 2-TC
    parts (v7x) additionally cap at ceil(B / num_tc) so the 'parallel' batch
    axis yields one maximal step per TensorCore; single-TC parts may use
    grid=1 (fewer, larger steps amortize the ~0.35us/step overhead)."""
    max_bt = max(1, budget // (2 * bytes_per_image))
    if num_tc >= 2 and batch >= 2:
        max_bt = min(max_bt, pl.cdiv(batch, num_tc))
    return max(1, min(batch, max_bt))


def cam_head_logits(x_nchw, weight):
    """x_nchw: (B, C, H, W); weight: (NC, C) or (NC, C, 1, 1) 1x1 conv weight.
    Returns logits of shape (B, NC) in float32."""
    B, C, H, W = x_nchw.shape
    NC = weight.shape[0]
    HW = H * W

    # Free, copy-less reshape: NCHW is row-major contiguous in (B, C, HW).
    # x is consumed in its native dtype (bf16 OK); no extra HBM pass.
    x = x_nchw.reshape(B, C, HW)
    # Tiny weight: reshape/transpose/cast once in the wrapper -> (C, NC) f32.
    w = jnp.asarray(weight).reshape(NC, C).T.astype(jnp.float32)

    budget, num_tc, vmem_physical = _chip_params()
    bytes_per_image = C * HW * x.dtype.itemsize
    bt = _pick_images_per_step(B, bytes_per_image, budget, num_tc)
    grid_b = pl.cdiv(B, bt)
    B_pad = grid_b * bt
    if B_pad != B:
        # Pad the batch so bt stays VMEM-optimal for odd/prime B; padded rows
        # are zeros and are sliced off below.
        x = jnp.pad(x, ((0, B_pad - B), (0, 0), (0, 0)))

    # VMEM actually needed: double-buffered x block + resident weight +
    # double-buffered output block + headroom.
    # TODO(synk): if a single image (bt=1) exceeds ~0.75*VMEM, tile HW too.
    need = (2 * bt * bytes_per_image + C * NC * 4 + 2 * bt * NC * 4
            + (1 << 20))
    vmem_limit = int(min(max(need, 32 * 1024 * 1024),
                         int(0.75 * vmem_physical)))

    kernel = functools.partial(_cam_logits_kernel, inv_hw=1.0 / float(HW))

    logits3 = pl.pallas_call(
        kernel,
        out_shape=jax.ShapeDtypeStruct((grid_b, bt, NC), jnp.float32),
        grid_spec=pltpu.PrefetchScalarGridSpec(
            num_scalar_prefetch=0,
            grid=(grid_b,),
            in_specs=[
                pl.BlockSpec((bt, C, HW), lambda i: (i, 0, 0)),
                pl.BlockSpec((C, NC), lambda i: (0, 0)),
            ],
            out_specs=pl.BlockSpec((1, bt, NC), lambda i: (i, 0, 0)),
        ),
        compiler_params=pltpu.CompilerParams(
            dimension_semantics=("parallel",),
            vmem_limit_bytes=vmem_limit),
        cost_estimate=pl.CostEstimate(
            flops=int(B_pad * C * HW + 2 * B_pad * C * NC),
            transcendentals=0,
            bytes_accessed=int(B_pad * C * HW * x.dtype.itemsize
                               + C * NC * 4 + B_pad * NC * 4)),
    )(x, w)

    return logits3.reshape(B_pad, NC)[:B]


def cam_head_forward(x_nchw, weight, gt_classes_img_oh=None):
    """Full CAMHead forward: returns (loss, logits)."""
    logits = cam_head_logits(x_nchw, weight)
    if gt_classes_img_oh is None:
        # gt_instances is None branch: 0.0 * logits.sum()
        return 0.0 * jnp.sum(logits), logits
    # BCE-with-logits (mean reduction) * 0.1 on the tiny (B, NC) logits,
    # numerically-stable torch formulation; done in plain JAX (16 numbers).
    z = logits
    y = gt_classes_img_oh.astype(jnp.float32)
    per = jnp.maximum(z, 0.0) - z * y + jnp.log1p(jnp.exp(-jnp.abs(z)))
    return jnp.mean(per) * 0.1, logits


def get_image_level_gt(gt_classes_per_image, num_classes):
    """Plain-JAX equivalent of CAMHead.get_image_level_gt: instance-level
    class ids -> per-image multi-hot (duplicates collapse naturally)."""
    rows = []
    for gt in gt_classes_per_image:
        oh = jnp.zeros((num_classes,), jnp.float32).at[jnp.asarray(gt)].set(1.0)
        rows.append(oh)
    return jnp.stack(rows, axis=0)


def _reference(x_nchw, weight, gt_oh):
    B, C, H, W = x_nchw.shape
    z = jnp.einsum("bchw,nc->bn", x_nchw.astype(jnp.float32),
                   weight.astype(jnp.float32)) / (H * W)
    y = gt_oh.astype(jnp.float32)
    per = jnp.maximum(z, 0.0) - z * y + jnp.log1p(jnp.exp(-jnp.abs(z)))
    return jnp.mean(per) * 0.1, z


if __name__ == "__main__":
    key = jax.random.PRNGKey(0)
    k_x, k_w = jax.random.split(key)

    # 'plain5' backbone output -> in_channels = 512
    B, C, H, W = 2, 512, 16, 16
    NUM_CLASSES = 8

    x = jax.random.normal(k_x, (B, C, H, W), dtype=jnp.float32)

    # c2_msra_fill: kaiming_normal_(fan_out, relu) -> std = sqrt(2 / fan_out),
    # fan_out = num_classes * 1 * 1 for a 1x1 conv weight (NC, C, 1, 1).
    std = (2.0 / NUM_CLASSES) ** 0.5
    weight = std * jax.random.normal(k_w, (NUM_CLASSES, C), dtype=jnp.float32)

    # Synthetic instance-level gt classes per image (as in gt_instances).
    gt_classes_per_image = [[0, 2, 2, 5], [1, 3, 7]]
    gt_oh = get_image_level_gt(gt_classes_per_image, NUM_CLASSES)

    loss, logits = cam_head_forward(x, weight, gt_oh)
    loss = jax.block_until_ready(loss)

    ref_loss, ref_logits = _reference(x, weight, gt_oh)
    assert jnp.allclose(logits, ref_logits, atol=1e-4, rtol=1e-4)
    assert jnp.allclose(loss, ref_loss, atol=1e-5, rtol=1e-5)

    # gt_instances=None branch: loss must be exactly 0.0 * logits.sum().
    loss_none, _ = cam_head_forward(x, weight, None)
    assert jnp.allclose(jax.block_until_ready(loss_none), 0.0)

    # Odd batch (non-divisor / padded-tail path) sanity check.
    B2 = 3
    x3 = jax.random.normal(jax.random.PRNGKey(1), (B2, C, H, W), jnp.float32)
    gt3 = get_image_level_gt([[0], [1, 2], [3]], NUM_CLASSES)
    loss3, logits3 = cam_head_forward(x3, weight, gt3)
    ref_loss3, ref_logits3 = _reference(x3, weight, gt3)
    assert jnp.allclose(jax.block_until_ready(logits3), ref_logits3,
                        atol=1e-4, rtol=1e-4)
    assert jnp.allclose(loss3, ref_loss3, atol=1e-5, rtol=1e-5)

    print("KERNEL_OK")
</pallas_src>

<mosaic_0001>
module attributes {stable_mosaic.version = 11 : i64} {
  func.func @_cam_logits_kernel(%arg0: i32, %arg1: memref<2x512x256xf32, #tpu.memory_space<vmem>>, %arg2: memref<512x8xf32, #tpu.memory_space<vmem>>, %arg3: memref<1x2x8xf32, #tpu.memory_space<vmem>>) attributes {dimension_semantics = [#tpu.dimension_semantics<parallel>], iteration_bounds = array<i64: 1>, scalar_prefetch = 0 : i64, scratch_operands = 0 : i64, tpu.core_type = #tpu.core_type<tc>, window_params = [{transform_indices = @transform_0, window_bounds = array<i64: 2, 512, 256>}, {pipeline_mode = #tpu.pipeline_mode<synchronous>, transform_indices = @transform_1, window_bounds = array<i64: 512, 8>}, {transform_indices = @transform_2, window_bounds = array<i64: 1, 2, 8>}]} {
    %c0 = arith.constant 0 : index
    %c0_0 = arith.constant 0 : index
    %c0_1 = arith.constant 0 : index
    %0 = vector.load %arg1[%c0, %c0_0, %c0_1] : memref<2x512x256xf32, #tpu.memory_space<vmem>>, vector<2x512x256xf32>
    %1 = vector.extract_strided_slice %0 {offsets = [0, 0, 0], sizes = [2, 512, 128], strides = [1, 1, 1]} : vector<2x512x256xf32> to vector<2x512x128xf32>
    %2 = vector.extract_strided_slice %0 {offsets = [0, 0, 128], sizes = [2, 512, 128], strides = [1, 1, 1]} : vector<2x512x256xf32> to vector<2x512x128xf32>
    %3 = arith.addf %1, %2 : vector<2x512x128xf32>
    %cst = arith.constant dense<0.000000e+00> : vector<2x512xf32>
    %4 = vector.multi_reduction <add>, %3, %cst [2] : vector<2x512x128xf32> to vector<2x512xf32>
    %cst_2 = arith.constant 3.906250e-03 : f32
    %5 = vector.broadcast %cst_2 : f32 to vector<2x512xf32>
    %6 = arith.mulf %4, %5 : vector<2x512xf32>
    %c0_3 = arith.constant 0 : index
    %c0_4 = arith.constant 0 : index
    %7 = vector.load %arg2[%c0_3, %c0_4] : memref<512x8xf32, #tpu.memory_space<vmem>>, vector<512x8xf32>
    %cst_5 = arith.constant dense<0.000000e+00> : vector<2x8xf32>
    %8 = tpu.matmul %6, %7, %cst_5 {dimension_numbers = #tpu.dot_dimension_numbers<[1], [0], [0], [1], [0, 0, 1, 1], [], []>} : vector<2x512xf32>, vector<512x8xf32>, vector<2x8xf32> -> vector<2x8xf32>
    %c0_6 = arith.constant 0 : index
    %c0_7 = arith.constant 0 : index
    %c0_8 = arith.constant 0 : index
    %9 = vector.load %arg3[%c0_6, %c0_7, %c0_8] : memref<1x2x8xf32, #tpu.memory_space<vmem>>, vector<1x2x8xf32>
    %10 = vector.shape_cast %9 : vector<1x2x8xf32> to vector<2x8xf32>
    %11 = vector.shape_cast %8 : vector<2x8xf32> to vector<1x2x8xf32>
    tpu.vector_store %arg3[%c0_6, %c0_7, %c0_8], %11 {strides = array<i32>} : memref<1x2x8xf32, #tpu.memory_space<vmem>>, vector<1x2x8xf32>,
    return
  }
  func.func @transform_0(%arg0: i32) -> (i32, i32, i32) {
    %c0_i32 = arith.constant 0 : i32
    %c0_i32_0 = arith.constant 0 : i32
    %c0_i32_1 = arith.constant 0 : i32
    return %arg0, %c0_i32, %c0_i32_0 : i32, i32, i32
  }
  func.func @transform_1(%arg0: i32) -> (i32, i32) {
    %c0_i32 = arith.constant 0 : i32
    %c0_i32_0 = arith.constant 0 : i32
    %c0_i32_1 = arith.constant 0 : i32
    return %c0_i32, %c0_i32_0 : i32, i32
  }
  func.func @transform_2(%arg0: i32) -> (i32, i32, i32) {
    %c0_i32 = arith.constant 0 : i32
    %c0_i32_0 = arith.constant 0 : i32
    %c0_i32_1 = arith.constant 0 : i32
    return %arg0, %c0_i32, %c0_i32_0 : i32, i32, i32
  }
}

</mosaic_0001>

<bundles_post_ra>
// kernel: tpu_custom_call.1
= control target key start
LH: loop header
LB: loop body
LE: loop exit
PB: predicated region body
PF: predicated region fallthrough
CT: control target
= control target key end

     0   :  { %7 = vsyncpa [#allocation3], 0  ;;  %s2776_s0 = inlined_call_operand.hbm [shape: f32[2,512,256], index: 0, kind: input, shape index: {}]   ;;  %s2777_s1 = inlined_call_operand.vmem [shape: f32[512,8], index: 1, kind: input, shape index: {}]   ;;  %s2778_s2 = inlined_call_operand.hbm [shape: f32[1,2,8], index: 2, kind: output, shape index: {}]  }
   0x1   :  { %8 = vsyncpa [#allocation4], 0  ;;  %s2002_s9 = smov [#allocation2]   ;;  %s1954_s13 = scalar_lea.hbm %s2776_s0, 32768 }
   0x2   :  { %s14_s10 = sshll.u32 %s2002_s9, 4  ;;  %p1955_p0 = scmp.ne.s32.totalorder %s2776_s0, %s1954_s13  ;;  %s15_s10 = int_to_ptr.vmem [resolvable:$true] %s14_s10 }
   0x3   :  { %p1958_p1 = scmp.lt.u32.totalorder %s1954_s13, %s2776_s0 }
   0x5   :  { %p1960_p2 = pnand %p1958_p1, %p1955_p0 }
   0x7   :  { %1963 = shalt.err (!%p1960_p2)
}
   0x8   :  { %s1964_s18 = scalar_lea.vmem %s15_s10, 32768  ;;  %p1969_p4 = scmp.lt.s32.totalorder %s15_s10, %s15_s10 }
   0x9   :  { %p1965_p3 = scmp.ne.s32.totalorder %s15_s10, %s1964_s18  ;;  %p1970_p5 = scmp.lt.s32.totalorder %s1964_s18, %s1964_s18 }
   0xb   :  { %p1971_p6 = por %p1970_p5, %p1969_p4 }
   0xd   :  { %p1972_p7 = pnand %p1971_p6, %p1965_p3 }
   0xf   :  { %1975 = shalt.err (!%p1972_p7)
}
  0x10   :  { %s2003_s19 = smov 256   ;;  %s2004_s20 = smov 16  }
  0x11   :  { %20 = dma.hbm_to_vmem [thread:$0]  %s2776_s0, 32768, %s15_s10, [#allocation3], %s2003_s19, %s2003_s19, %s2004_s20  }
  0x12   :  { %1998 = dma.done.wait [#allocation3], 32768  }
  0x13   :  { %1999 = vsyncadd [#allocation3], 4294934528  ;;  %v122_v0 = vld [vmem:[#allocation2 + $0x300] sm:$0xff]  ;;  %v123_v1 = vld [vmem:[#allocation2 + $0x308] sm:$0xff]  ;;  %vm997_vm0 = vcmask 130112   ;;  %vm1004_vm1 = vcmask 195712  }
  0x14   :  { %v58_v2 = vld [vmem:[#allocation2 + $0x100] sm:$0xff]  ;;  %v330_v3 = vadd.f32 %v123_v1, %v122_v0  ;;  %v59_v4 = vld [vmem:[#allocation2 + $0x108] sm:$0xff]  ;;  %v124_v5 = vld [vmem:[#allocation2 + $0x310] sm:$0xff]  ;;  %vm1011_vm2 = vcmask 261312   ;;  %vm1018_vm3 = vcmask 326912   ;;  %vm1025_vm4 = vcmask 392512  }
  0x15   :  { %v125_v6 = vld [vmem:[#allocation2 + $0x318] sm:$0xff]  ;;  %v298_v7 = vadd.f32 %v59_v4, %v58_v2  ;;  %v60_v8 = vld [vmem:[#allocation2 + $0x110] sm:$0xff]  ;;  %v186_v14 = vld [vmem:[#allocation2 + $0x500] sm:$0xff]  ;;  %vm1032_vm5 = vcmask 458112   ;;  %vm1039_vm6 = vcmask 523712   ;;  %vm1046_vm7 = vcmask 589312  }
  0x16   :  { %v61_v9 = vld [vmem:[#allocation2 + $0x118] sm:$0xff]  ;;  %506 = vadd.xlane.f32.xlu1 %v330_v3  ;;  %v331_v10 = vadd.f32 %v125_v6, %v124_v5  ;;  %v188_v12 = vld [vmem:[#allocation2 + $0x510] sm:$0xff]  ;;  %v187_v15 = vld [vmem:[#allocation2 + $0x508] sm:$0xff]  ;;  %vm1053_vm8 = vcmask 654912   ;;  %vm1060_vm9 = vcmask 720512   ;;  %vm1067_vm10 = vcmask 786112  }
  0x17   :  { %442 = vadd.xlane.f32.xlu0 %v298_v7  ;;  %v299_v11 = vadd.f32 %v61_v9, %v60_v8  ;;  %v189_v13 = vld [vmem:[#allocation2 + $0x518] sm:$0xff]  ;;  %v362_v17 = vadd.f32 %v187_v15, %v186_v14  ;;  %v252_v18 = vld [vmem:[#allocation2 + $0x710] sm:$0xff]  ;;  %v250_v20 = vld [vmem:[#allocation2 + $0x700] sm:$0xff]  ;;  %vm1074_vm11 = vcmask 851712   ;;  %vm1081_vm12 = vcmask 917312  }
  0x18   :  { %v363_v16 = vadd.f32 %v189_v13, %v188_v12  ;;  %v253_v19 = vld [vmem:[#allocation2 + $0x718] sm:$0xff]  ;;  %v251_v21 = vld [vmem:[#allocation2 + $0x708] sm:$0xff]  ;;  %v28_v24 = vld [vmem:[#allocation2 + $0x10] sm:$0xff]  ;;  %vm1088_vm13 = vcmask 982912   ;;  %vm1095_vm14 = vcmask 1048512   ;;  %vm1650_vm15 = vcmask 1041409  }
  0x19   :  { %v395_v22 = vadd.f32 %v253_v19, %v252_v18  ;;  %v394_v23 = vadd.f32 %v251_v21, %v250_v20  ;;  %v29_v25 = vld [vmem:[#allocation2 + $0x18] sm:$0xff]  ;;  %v26_v26 = vld [vmem:[#allocation2] sm:$0xff]  ;;  %v27_v27 = vld [vmem:[#allocation2 + $0x8] sm:$0xff] }
  0x1a   :  { %508 = vadd.xlane.f32.xlu1 %v331_v10  ;;  %v283_v28 = vadd.f32 %v29_v25, %v28_v24  ;;  %v282_v29 = vadd.f32 %v27_v27, %v26_v26  ;;  %v90_v30 = vld [vmem:[#allocation2 + $0x200] sm:$0xff]  ;;  %v91_v31 = vld [vmem:[#allocation2 + $0x208] sm:$0xff]  ;;  %v92_v38 = vld [vmem:[#allocation2 + $0x210] sm:$0xff] }
  0x1b   :  { %444 = vadd.xlane.f32.xlu0 %v299_v11  ;;  %v62_v32 = vld [vmem:[#allocation2 + $0x120] sm:$0xff]  ;;  %v63_v33 = vld [vmem:[#allocation2 + $0x128] sm:$0xff]  ;;  %v314_v34 = vadd.f32 %v91_v31, %v90_v30  ;;  %v93_v39 = vld [vmem:[#allocation2 + $0x218] sm:$0xff] }
  0x1c   :  { %v300_v35 = vadd.f32 %v63_v33, %v62_v32  ;;  %v126_v36 = vld [vmem:[#allocation2 + $0x320] sm:$0xff]  ;;  %v127_v37 = vld [vmem:[#allocation2 + $0x328] sm:$0xff]  ;;  %v315_v41 = vadd.f32 %v93_v39, %v92_v38  ;;  %v156_v42 = vld [vmem:[#allocation2 + $0x410] sm:$0xff] }
  0x1d   :  { %v332_v40 = vadd.f32 %v127_v37, %v126_v36  ;;  %v157_v43 = vld [vmem:[#allocation2 + $0x418] sm:$0xff]  ;;  %v154_v44 = vld [vmem:[#allocation2 + $0x400] sm:$0xff]  ;;  %v155_v45 = vld [vmem:[#allocation2 + $0x408] sm:$0xff] }
  0x1e   :  { %572 = vadd.xlane.f32.xlu1 %v363_v16  ;;  %v347_v46 = vadd.f32 %v157_v43, %v156_v42  ;;  %v346_v47 = vadd.f32 %v155_v45, %v154_v44  ;;  %v218_v48 = vld [vmem:[#allocation2 + $0x600] sm:$0xff]  ;;  %v219_v49 = vld [vmem:[#allocation2 + $0x608] sm:$0xff]  ;;  %v220_v56 = vld [vmem:[#allocation2 + $0x610] sm:$0xff] }
  0x1f   :  { %570 = vadd.xlane.f32.xlu0 %v362_v17  ;;  %v190_v50 = vld [vmem:[#allocation2 + $0x520] sm:$0xff]  ;;  %v191_v51 = vld [vmem:[#allocation2 + $0x528] sm:$0xff]  ;;  %v378_v52 = vadd.f32 %v219_v49, %v218_v48  ;;  %v221_v57 = vld [vmem:[#allocation2 + $0x618] sm:$0xff] }
  0x20   :  { %v364_v53 = vadd.f32 %v191_v51, %v190_v50  ;;  %v254_v54 = vld [vmem:[#allocation2 + $0x720] sm:$0xff]  ;;  %v255_v55 = vld [vmem:[#allocation2 + $0x728] sm:$0xff]  ;;  %v379_v59 = vadd.f32 %v221_v57, %v220_v56  ;;  %v64_v60 = vld [vmem:[#allocation2 + $0x130] sm:$0xff] }
  0x21   :  { %v396_v58 = vadd.f32 %v255_v55, %v254_v54  ;;  %v65_v61 = vld [vmem:[#allocation2 + $0x138] sm:$0xff]  ;;  %v30_v62 = vld [vmem:[#allocation2 + $0x20] sm:$0xff]  ;;  %v31_v63 = vld [vmem:[#allocation2 + $0x28] sm:$0xff] }
  0x22   :  { %636 = vadd.xlane.f32.xlu1 %v395_v22  ;;  %v301_v0 = vadd.f32 %v65_v61, %v64_v60  ;;  %v284_v1 = vadd.f32 %v31_v63, %v30_v62  ;;  %v128_v2 = vld [vmem:[#allocation2 + $0x330] sm:$0xff]  ;;  %v129_v3 = vld [vmem:[#allocation2 + $0x338] sm:$0xff]  ;;  %v94_v4 = vld [vmem:[#allocation2 + $0x220] sm:$0xff] }
  0x23   :  { %634 = vadd.xlane.f32.xlu0 %v394_v23  ;;  %v95_v5 = vld [vmem:[#allocation2 + $0x228] sm:$0xff]  ;;  %v333_v6 = vadd.f32 %v129_v3, %v128_v2  ;;  %v192_v8 = vld [vmem:[#allocation2 + $0x530] sm:$0xff]  ;;  %v193_v9 = vld [vmem:[#allocation2 + $0x538] sm:$0xff] }
  0x24   :  { %v316_v7 = vadd.f32 %v95_v5, %v94_v4  ;;  %v158_v10 = vld [vmem:[#allocation2 + $0x420] sm:$0xff]  ;;  %v159_v11 = vld [vmem:[#allocation2 + $0x428] sm:$0xff]  ;;  %v365_v12 = vadd.f32 %v193_v9, %v192_v8  ;;  %v256_v14 = vld [vmem:[#allocation2 + $0x730] sm:$0xff] }
  0x25   :  { %v348_v13 = vadd.f32 %v159_v11, %v158_v10  ;;  %v257_v15 = vld [vmem:[#allocation2 + $0x738] sm:$0xff]  ;;  %v222_v16 = vld [vmem:[#allocation2 + $0x620] sm:$0xff]  ;;  %v223_v17 = vld [vmem:[#allocation2 + $0x628] sm:$0xff] }
  0x26   :  { %412 = vadd.xlane.f32.xlu1 %v283_v28  ;;  %v397_v18 = vadd.f32 %v257_v15, %v256_v14  ;;  %v380_v19 = vadd.f32 %v223_v17, %v222_v16  ;;  %v66_v20 = vld [vmem:[#allocation2 + $0x140] sm:$0xff]  ;;  %v67_v21 = vld [vmem:[#allocation2 + $0x148] sm:$0xff]  ;;  %v32_v22 = vld [vmem:[#allocation2 + $0x30] sm:$0xff] }
  0x27   :  { %410 = vadd.xlane.f32.xlu0 %v282_v29  ;;  %v33_v23 = vld [vmem:[#allocation2 + $0x38] sm:$0xff]  ;;  %v302_v24 = vadd.f32 %v67_v21, %v66_v20  ;;  %v130_v26 = vld [vmem:[#allocation2 + $0x340] sm:$0xff]  ;;  %v131_v27 = vld [vmem:[#allocation2 + $0x348] sm:$0xff] }
  0x28   :  { %v285_v25 = vadd.f32 %v33_v23, %v32_v22  ;;  %v96_v28 = vld [vmem:[#allocation2 + $0x230] sm:$0xff]  ;;  %v97_v29 = vld [vmem:[#allocation2 + $0x238] sm:$0xff]  ;;  %v334_v30 = vadd.f32 %v131_v27, %v130_v26  ;;  %v194_v32 = vld [vmem:[#allocation2 + $0x540] sm:$0xff] }
  0x29   :  { %v317_v31 = vadd.f32 %v97_v29, %v96_v28  ;;  %v195_v33 = vld [vmem:[#allocation2 + $0x548] sm:$0xff]  ;;  %v258_v38 = vld [vmem:[#allocation2 + $0x740] sm:$0xff]  ;;  %v68_v44 = vld [vmem:[#allocation2 + $0x150] sm:$0xff] }
  0x2a   :  { %474 = vadd.xlane.f32.xlu1 %v314_v34  ;;  %v160_v34 = vld [vmem:[#allocation2 + $0x430] sm:$0xff]  ;;  %v366_v36 = vadd.f32 %v195_v33, %v194_v32  ;;  %v259_v39 = vld [vmem:[#allocation2 + $0x748] sm:$0xff]  ;;  %v69_v45 = vld [vmem:[#allocation2 + $0x158] sm:$0xff] }
  0x2b   :  { %446 = vadd.xlane.f32.xlu0 %v300_v35  ;;  %v161_v35 = vld [vmem:[#allocation2 + $0x438] sm:$0xff]  ;;  %v398_v42 = vadd.f32 %v259_v39, %v258_v38  ;;  %v303_v48 = vadd.f32 %v69_v45, %v68_v44  ;;  %v132_v50 = vld [vmem:[#allocation2 + $0x350] sm:$0xff]  ;;  %v70_v4 = vld [vmem:[#allocation2 + $0x160] sm:$0xff] }
  0x2c   :  { %v349_v37 = vadd.f32 %v161_v35, %v160_v34  ;;  %v133_v51 = vld [vmem:[#allocation2 + $0x358] sm:$0xff]  ;;  %v196_v56 = vld [vmem:[#allocation2 + $0x550] sm:$0xff]  ;;  %v71_v5 = vld [vmem:[#allocation2 + $0x168] sm:$0xff] }
  0x2d   :  { %v335_v54 = vadd.f32 %v133_v51, %v132_v50  ;;  %v197_v57 = vld [vmem:[#allocation2 + $0x558] sm:$0xff]  ;;  %v260_v62 = vld [vmem:[#allocation2 + $0x750] sm:$0xff]  ;;  %v304_v8 = vadd.f32 %v71_v5, %v70_v4  ;;  %v134_v10 = vld [vmem:[#allocation2 + $0x360] sm:$0xff] }
  0x2e   :  { %510 = vadd.xlane.f32.xlu1 %v332_v40  ;;  %v224_v40 = vld [vmem:[#allocation2 + $0x630] sm:$0xff]  ;;  %v367_v60 = vadd.f32 %v197_v57, %v196_v56  ;;  %v261_v63 = vld [vmem:[#allocation2 + $0x758] sm:$0xff]  ;;  %v135_v11 = vld [vmem:[#allocation2 + $0x368] sm:$0xff] }
  0x2f   :  { %476 = vadd.xlane.f32.xlu0 %v315_v41  ;;  %v225_v41 = vld [vmem:[#allocation2 + $0x638] sm:$0xff]  ;;  %v399_v2 = vadd.f32 %v261_v63, %v260_v62  ;;  %v336_v14 = vadd.f32 %v135_v11, %v134_v10  ;;  %v198_v16 = vld [vmem:[#allocation2 + $0x560] sm:$0xff]  ;;  %v199_v17 = vld [vmem:[#allocation2 + $0x568] sm:$0xff] }
  0x30   :  { %v381_v43 = vadd.f32 %v225_v41, %v224_v40  ;;  %v368_v20 = vadd.f32 %v199_v17, %v198_v16  ;;  %v262_v22 = vld [vmem:[#allocation2 + $0x760] sm:$0xff]  ;;  %v263_v23 = vld [vmem:[#allocation2 + $0x768] sm:$0xff]  ;;  %v72_v28 = vld [vmem:[#allocation2 + $0x170] sm:$0xff] }
  0x31   :  { %v400_v26 = vadd.f32 %v263_v23, %v262_v22  ;;  %v73_v29 = vld [vmem:[#allocation2 + $0x178] sm:$0xff]  ;;  %v136_v34 = vld [vmem:[#allocation2 + $0x370] sm:$0xff]  ;;  %v986_v22 = vlaneseq }
  0x32   :  { %540 = vadd.xlane.f32.xlu1 %v347_v46  ;;  %v34_v46 = vld [vmem:[#allocation2 + $0x40] sm:$0xff]  ;;  %v305_v32 = vadd.f32 %v73_v29, %v72_v28  ;;  %v137_v35 = vld [vmem:[#allocation2 + $0x378] sm:$0xff]  ;;  %v200_v40 = vld [vmem:[#allocation2 + $0x570] sm:$0xff] }
  0x33   :  { %538 = vadd.xlane.f32.xlu0 %v346_v47  ;;  %v35_v47 = vld [vmem:[#allocation2 + $0x48] sm:$0xff]  ;;  %v337_v38 = vadd.f32 %v137_v35, %v136_v34  ;;  %v201_v41 = vld [vmem:[#allocation2 + $0x578] sm:$0xff]  ;;  %v170_v28 = vld [vmem:[#allocation2 + $0x480] sm:$0xff] }
  0x34   :  { %v286_v49 = vadd.f32 %v35_v47, %v34_v46  ;;  %v369_v44 = vadd.f32 %v201_v41, %v200_v40  ;;  %v264_v46 = vld [vmem:[#allocation2 + $0x770] sm:$0xff]  ;;  %v265_v47 = vld [vmem:[#allocation2 + $0x778] sm:$0xff]  ;;  %v171_v29 = vld [vmem:[#allocation2 + $0x488] sm:$0xff] }
  0x35   :  { %v401_v50 = vadd.f32 %v265_v47, %v264_v46  ;;  %v354_v34 = vadd.f32 %v171_v29, %v170_v28  ;;  %v268_v35 = vld [vmem:[#allocation2 + $0x790] sm:$0xff]  ;;  %v78_v47 = vld [vmem:[#allocation2 + $0x1a0] sm:$0xff] }
  0x36   :  { %602 = vadd.xlane.f32.xlu1 %v378_v52  ;;  %v98_v52 = vld [vmem:[#allocation2 + $0x240] sm:$0xff] }
  0x37   :  { %574 = vadd.xlane.f32.xlu0 %v364_v53  ;;  %v99_v53 = vld [vmem:[#allocation2 + $0x248] sm:$0xff] }
  0x38   :  { %v318_v55 = vadd.f32 %v99_v53, %v98_v52  ;;  %v74_v52 = vld [vmem:[#allocation2 + $0x180] sm:$0xff]  ;;  %v75_v53 = vld [vmem:[#allocation2 + $0x188] sm:$0xff] }
  0x39   :  { %v306_v56 = vadd.f32 %v75_v53, %v74_v52  ;;  %v45_v52 = vld [vmem:[#allocation2 + $0x98] sm:$0xff] }
  0x3a   :  { %638 = vadd.xlane.f32.xlu1 %v396_v58  ;;  %v162_v58 = vld [vmem:[#allocation2 + $0x440] sm:$0xff] }
  0x3b   :  { %604 = vadd.xlane.f32.xlu0 %v379_v59  ;;  %v163_v59 = vld [vmem:[#allocation2 + $0x448] sm:$0xff] }
  0x3c   :  { %v350_v61 = vadd.f32 %v163_v59, %v162_v58  ;;  %v138_v58 = vld [vmem:[#allocation2 + $0x380] sm:$0xff]  ;;  %v139_v59 = vld [vmem:[#allocation2 + $0x388] sm:$0xff] }
  0x3d   :  { %v338_v62 = vadd.f32 %v139_v59, %v138_v58 }
  0x3e   :  { %448 = vadd.xlane.f32.xlu1 %v301_v0  ;;  %v226_v0 = vld [vmem:[#allocation2 + $0x640] sm:$0xff] }
  0x3f   :  { %414 = vadd.xlane.f32.xlu0 %v284_v1  ;;  %v227_v1 = vld [vmem:[#allocation2 + $0x648] sm:$0xff] }
  0x40   :  { %v382_v3 = vadd.f32 %v227_v1, %v226_v0  ;;  %v202_v0 = vld [vmem:[#allocation2 + $0x580] sm:$0xff]  ;;  %v203_v1 = vld [vmem:[#allocation2 + $0x588] sm:$0xff] }
  0x41   :  { %v370_v4 = vadd.f32 %v203_v1, %v202_v0 }
  0x42   :  { %512 = vadd.xlane.f32.xlu1 %v333_v6  ;;  %v36_v6 = vld [vmem:[#allocation2 + $0x50] sm:$0xff] }
  0x43   :  { %478 = vadd.xlane.f32.xlu0 %v316_v7  ;;  %v37_v7 = vld [vmem:[#allocation2 + $0x58] sm:$0xff] }
  0x44   :  { %v287_v9 = vadd.f32 %v37_v7, %v36_v6  ;;  %v266_v6 = vld [vmem:[#allocation2 + $0x780] sm:$0xff]  ;;  %v267_v7 = vld [vmem:[#allocation2 + $0x788] sm:$0xff] }
  0x45   :  { %v402_v10 = vadd.f32 %v267_v7, %v266_v6 }
  0x46   :  { %576 = vadd.xlane.f32.xlu1 %v365_v12  ;;  %v100_v12 = vld [vmem:[#allocation2 + $0x250] sm:$0xff] }
  0x47   :  { %542 = vadd.xlane.f32.xlu0 %v348_v13  ;;  %v101_v13 = vld [vmem:[#allocation2 + $0x258] sm:$0xff] }
  0x48   :  { %v319_v15 = vadd.f32 %v101_v13, %v100_v12  ;;  %v76_v12 = vld [vmem:[#allocation2 + $0x190] sm:$0xff]  ;;  %v77_v13 = vld [vmem:[#allocation2 + $0x198] sm:$0xff] }
  0x49   :  { %v307_v16 = vadd.f32 %v77_v13, %v76_v12  ;;  %v207_v12 = vld [vmem:[#allocation2 + $0x5a8] sm:$0xff] }
  0x4a   :  { %640 = vadd.xlane.f32.xlu1 %v397_v18  ;;  %v164_v18 = vld [vmem:[#allocation2 + $0x450] sm:$0xff] }
  0x4b   :  { %606 = vadd.xlane.f32.xlu0 %v380_v19  ;;  %v165_v19 = vld [vmem:[#allocation2 + $0x458] sm:$0xff] }
  0x4c   :  { %v351_v21 = vadd.f32 %v165_v19, %v164_v18  ;;  %v140_v18 = vld [vmem:[#allocation2 + $0x390] sm:$0xff]  ;;  %v141_v19 = vld [vmem:[#allocation2 + $0x398] sm:$0xff] }
  0x4d   :  { %v339_v23 = vadd.f32 %v141_v19, %v140_v18 }
  0x4e   :  { %450 = vadd.xlane.f32.xlu1 %v302_v24  ;;  %v228_v24 = vld [vmem:[#allocation2 + $0x650] sm:$0xff] }
  0x4f   :  { %416 = vadd.xlane.f32.xlu0 %v285_v25  ;;  %v229_v25 = vld [vmem:[#allocation2 + $0x658] sm:$0xff] }
  0x50   :  { %v383_v27 = vadd.f32 %v229_v25, %v228_v24  ;;  %v204_v25 = vld [vmem:[#allocation2 + $0x590] sm:$0xff] }
  0x52   :  { %514 = vadd.xlane.f32.xlu1 %v334_v30  ;;  %v38_v30 = vld [vmem:[#allocation2 + $0x60] sm:$0xff] }
  0x53   :  { %480 = vadd.xlane.f32.xlu0 %v317_v31  ;;  %v39_v31 = vld [vmem:[#allocation2 + $0x68] sm:$0xff] }
  0x54   :  { %v288_v33 = vadd.f32 %v39_v31, %v38_v30  ;;  %v2035_v30 = vshrl.u32 %v986_v22, 7 }
  0x56   :  { %578 = vadd.xlane.f32.xlu1 %v366_v36  ;;  %v102_v36 = vld [vmem:[#allocation2 + $0x260] sm:$0xff] }
  0x57   :  { %544 = vadd.xlane.f32.xlu0 %v349_v37  ;;  %v103_v37 = vld [vmem:[#allocation2 + $0x268] sm:$0xff] }
  0x58   :  { %v320_v39 = vadd.f32 %v103_v37, %v102_v36  ;;  %v269_v36 = vld [vmem:[#allocation2 + $0x798] sm:$0xff] }
  0x5a   :  { %642 = vadd.xlane.f32.xlu1 %v398_v42  ;;  %v166_v42 = vld [vmem:[#allocation2 + $0x460] sm:$0xff] }
  0x5b   :  { %608 = vadd.xlane.f32.xlu0 %v381_v43  ;;  %v167_v43 = vld [vmem:[#allocation2 + $0x468] sm:$0xff] }
  0x5c   :  { %v352_v45 = vadd.f32 %v167_v43, %v166_v42  ;;  %v403_v43 = vadd.f32 %v269_v36, %v268_v35 }
  0x5e   :  { %452 = vadd.xlane.f32.xlu1 %v303_v48  ;;  %v230_v48 = vld [vmem:[#allocation2 + $0x660] sm:$0xff] }
  0x5f   :  { %418 = vadd.xlane.f32.xlu0 %v286_v49  ;;  %v231_v49 = vld [vmem:[#allocation2 + $0x668] sm:$0xff] }
  0x60   :  { %v384_v51 = vadd.f32 %v231_v49, %v230_v48  ;;  %v79_v48 = vld [vmem:[#allocation2 + $0x1a8] sm:$0xff] }
  0x62   :  { %516 = vadd.xlane.f32.xlu1 %v335_v54  ;;  %v40_v54 = vld [vmem:[#allocation2 + $0x70] sm:$0xff] }
  0x63   :  { %482 = vadd.xlane.f32.xlu0 %v318_v55  ;;  %v41_v55 = vld [vmem:[#allocation2 + $0x78] sm:$0xff] }
  0x64   :  { %v289_v57 = vadd.f32 %v41_v55, %v40_v54 }
  0x66   :  { %580 = vadd.xlane.f32.xlu1 %v367_v60  ;;  %v104_v60 = vld [vmem:[#allocation2 + $0x270] sm:$0xff] }
  0x67   :  { %546 = vadd.xlane.f32.xlu0 %v350_v61  ;;  %v105_v61 = vld [vmem:[#allocation2 + $0x278] sm:$0xff] }
  0x68   :  { %v321_v63 = vadd.f32 %v105_v61, %v104_v60  ;;  %v142_v61 = vld [vmem:[#allocation2 + $0x3a0] sm:$0xff] }
  0x6a   :  { %644 = vadd.xlane.f32.xlu1 %v399_v2  ;;  %v168_v2 = vld [vmem:[#allocation2 + $0x470] sm:$0xff] }
  0x6b   :  { %610 = vadd.xlane.f32.xlu0 %v382_v3  ;;  %v169_v3 = vld [vmem:[#allocation2 + $0x478] sm:$0xff] }
  0x6c   :  { %v353_v5 = vadd.f32 %v169_v3, %v168_v2  ;;  %v108_v2 = vld [vmem:[#allocation2 + $0x290] sm:$0xff]  ;;  %v109_v3 = vld [vmem:[#allocation2 + $0x298] sm:$0xff] }
  0x6e   :  { %454 = vadd.xlane.f32.xlu1 %v304_v8  ;;  %v232_v8 = vld [vmem:[#allocation2 + $0x670] sm:$0xff] }
  0x6f   :  { %420 = vadd.xlane.f32.xlu0 %v287_v9  ;;  %v233_v9 = vld [vmem:[#allocation2 + $0x678] sm:$0xff] }
  0x70   :  { %v385_v11 = vadd.f32 %v233_v9, %v232_v8 }
  0x72   :  { %518 = vadd.xlane.f32.xlu1 %v336_v14  ;;  %v42_v14 = vld [vmem:[#allocation2 + $0x80] sm:$0xff] }
  0x73   :  { %484 = vadd.xlane.f32.xlu0 %v319_v15  ;;  %v43_v15 = vld [vmem:[#allocation2 + $0x88] sm:$0xff] }
  0x74   :  { %v290_v17 = vadd.f32 %v43_v15, %v42_v14  ;;  %v172_v15 = vld [vmem:[#allocation2 + $0x490] sm:$0xff] }
  0x76   :  { %582 = vadd.xlane.f32.xlu1 %v368_v20  ;;  %v106_v20 = vld [vmem:[#allocation2 + $0x280] sm:$0xff] }
  0x77   :  { %548 = vadd.xlane.f32.xlu0 %v351_v21  ;;  %v107_v21 = vld [vmem:[#allocation2 + $0x288] sm:$0xff] }
  0x78   :  { %v322_v24 = vadd.f32 %v107_v21, %v106_v20 }
  0x7a   :  { %646 = vadd.xlane.f32.xlu1 %v400_v26  ;;  %v205_v26 = vld [vmem:[#allocation2 + $0x598] sm:$0xff] }
  0x7b   :  { %612 = vadd.xlane.f32.xlu0 %v383_v27  ;;  %v2033_v27 = vand.u32 127, %v986_v22  ;;  %v371_v31 = vadd.f32 %v205_v26, %v204_v25  ;;  %v270_v25 = vld [vmem:[#allocation2 + $0x7a0] sm:$0xff]  ;;  %v271_v26 = vld [vmem:[#allocation2 + $0x7a8] sm:$0xff] }
  0x7c   :  { %v404_v36 = vadd.f32 %v271_v26, %v270_v25 }
  0x7d   :  { %v2040_v40 = vsub.s32 %v2033_v27, %v2035_v30 }
  0x7e   :  { %456 = vadd.xlane.f32.xlu1 %v305_v32  ;;  %v992_v32 = vadd.s32 4294967288, %v2033_v27 }
  0x7f   :  { %422 = vadd.xlane.f32.xlu0 %v288_v33 }
  0x80   :  { %v2043_v42 = vsub.s32 %v992_v32, %v2035_v30  ;;  %v237_v32 = vld [vmem:[#allocation2 + $0x698] sm:$0xff] }
  0x82   :  { %520 = vadd.xlane.f32.xlu1 %v337_v38  ;;  %v234_v38 = vld [vmem:[#allocation2 + $0x680] sm:$0xff] }
  0x83   :  { %486 = vadd.xlane.f32.xlu0 %v320_v39  ;;  %v235_v39 = vld [vmem:[#allocation2 + $0x688] sm:$0xff] }
  0x84   :  { %v386_v46 = vadd.f32 %v235_v39, %v234_v38 }
  0x86   :  { %584 = vadd.xlane.f32.xlu1 %v369_v44 }
  0x87   :  { %550 = vadd.xlane.f32.xlu0 %v352_v45 }
  0x8a   :  { %648 = vadd.xlane.f32.xlu1 %v401_v50 }
  0x8b   :  { %614 = vadd.xlane.f32.xlu0 %v384_v51  ;;  %v44_v51 = vld [vmem:[#allocation2 + $0x90] sm:$0xff] }
  0x8c   :  { %v291_v60 = vadd.f32 %v45_v52, %v44_v51 }
  0x8e   :  { %458 = vadd.xlane.f32.xlu1 %v306_v56  ;;  %v308_v56 = vadd.f32 %v79_v48, %v78_v47  ;;  %v47_v47 = vld [vmem:[#allocation2 + $0xa8] sm:$0xff] }
  0x8f   :  { %424 = vadd.xlane.f32.xlu0 %v289_v57 }
  0x92   :  { %522 = vadd.xlane.f32.xlu1 %v338_v62  ;;  %v143_v62 = vld [vmem:[#allocation2 + $0x3a8] sm:$0xff] }
  0x93   :  { %488 = vadd.xlane.f32.xlu0 %v321_v63  ;;  %v340_v7 = vadd.f32 %v143_v62, %v142_v61 }
  0x96   :  { %586 = vadd.xlane.f32.xlu1 %v370_v4 }
  0x97   :  { %552 = vadd.xlane.f32.xlu0 %v353_v5 }
  0x9a   :  { %650 = vadd.xlane.f32.xlu1 %v402_v10  ;;  %v323_v10 = vadd.f32 %v109_v3, %v108_v2 }
  0x9b   :  { %616 = vadd.xlane.f32.xlu0 %v385_v11  ;;  %v206_v11 = vld [vmem:[#allocation2 + $0x5a0] sm:$0xff] }
  0x9c   :  { %v372_v20 = vadd.f32 %v207_v12, %v206_v11  ;;  %v174_v11 = vld [vmem:[#allocation2 + $0x4a0] sm:$0xff]  ;;  %v175_v12 = vld [vmem:[#allocation2 + $0x4a8] sm:$0xff] }
  0x9e   :  { %460 = vadd.xlane.f32.xlu1 %v307_v16  ;;  %v173_v16 = vld [vmem:[#allocation2 + $0x498] sm:$0xff] }
  0x9f   :  { %426 = vadd.xlane.f32.xlu0 %v290_v17 }
  0xa2   :  { %524 = vadd.xlane.f32.xlu1 %v339_v23  ;;  %v355_v23 = vadd.f32 %v173_v16, %v172_v15 }
  0xa3   :  { %490 = vadd.xlane.f32.xlu0 %v322_v24  ;;  %v507_v33 = vpop.xlane.xlu1 %506  ;;  %v999_v24 = vadd.s32 4294967280, %v2033_v27 }
  0xa4   :  { %v443_v37 = vpop.xlane.xlu0 %442  ;;  %v714_v41 = vmul.f32 0.00390625, %v507_v33 }
  0xa5   :  { %v682_v44 = vmul.f32 0.00390625, %v443_v37  ;;  %v2069_v39 = vsub.s32 %v999_v24, %v2035_v30  ;;  %v239_v24 = vld [vmem:[#allocation2 + $0x6a8] sm:$0xff] }
  0xa6   :  { %588 = vadd.xlane.f32.xlu1 %v371_v31  ;;  %v1258_v54 = vrot.slane %v714_v41, %v2040_v40  ;;  %v236_v31 = vld [vmem:[#allocation2 + $0x690] sm:$0xff] }
  0xa7   :  { %554 = vadd.xlane.f32.xlu0 %v354_v34  ;;  %v509_v45 = vpop.xlane.xlu1 %508  ;;  %v1100_v57 = vrot.slane %v682_v44, %v2040_v40  ;;  %v387_v41 = vadd.f32 %v237_v32, %v236_v31  ;;  %v81_v44 = vld [vmem:[#allocation2 + $0x1b8] sm:$0xff] }
  0xa8   :  { %v715_v49 = vmul.f32 0.00390625, %v509_v45  ;;  %v445_v50 = vpop.xlane.xlu0 %444 }
  0xa9   :  { %v683_v53 = vmul.f32 0.00390625, %v445_v50 }
  0xaa   :  { %v1262_v55 = vrot.slane %v715_v49, %v2043_v42  ;;  %652 = vadd.xlane.f32.xlu1 %v403_v43  ;;  %v80_v43 = vld [vmem:[#allocation2 + $0x1b0] sm:$0xff] }
  0xab   :  { %v1104_v58 = vrot.slane %v683_v53, %v2043_v42  ;;  %618 = vadd.xlane.f32.xlu0 %v386_v46  ;;  %v573_v59 = vpop.xlane.xlu1 %572  ;;  %v46_v46 = vld [vmem:[#allocation2 + $0xa0] sm:$0xff]  ;;  %v309_v50 = vadd.f32 %v81_v44, %v80_v43  ;;  %v48_v43 = vld [vmem:[#allocation2 + $0xb0] sm:$0xff]  ;;  %v49_v44 = vld [vmem:[#allocation2 + $0xb8] sm:$0xff] }
  0xac   :  { %v2050_v63 = vsel %vm997_vm0, %v1262_v55, %v1258_v54  ;;  %v747_v0 = vmul.f32 0.00390625, %v573_v59  ;;  %v571_v1 = vpop.xlane.xlu0 %570  ;;  %v292_v54 = vadd.f32 %v47_v47, %v46_v46  ;;  %v144_v55 = vld [vmem:[#allocation2 + $0x3b0] sm:$0xff]  ;;  %v110_v59 = vld [vmem:[#allocation2 + $0x2a0] sm:$0xff] }
  0xad   :  { %v2053_v4 = vsel %vm997_vm0, %v1104_v58, %v1100_v57  ;;  %v746_v5 = vmul.f32 0.00390625, %v571_v1 }
  0xae   :  { %v1420_v6 = vrot.slane %v747_v0, %v2043_v42  ;;  %462 = vadd.xlane.f32.xlu1 %v308_v56  ;;  %v145_v56 = vld [vmem:[#allocation2 + $0x3b8] sm:$0xff] }
  0xaf   :  { %v1416_v8 = vrot.slane %v746_v5, %v2040_v40  ;;  %428 = vadd.xlane.f32.xlu0 %v291_v60  ;;  %v637_v9 = vpop.xlane.xlu1 %636  ;;  %v111_v60 = vld [vmem:[#allocation2 + $0x2a8] sm:$0xff]  ;;  %v341_v1 = vadd.f32 %v145_v56, %v144_v55  ;;  %v146_v55 = vld [vmem:[#allocation2 + $0x3c0] sm:$0xff] }
  0xb0   :  { %v779_v13 = vmul.f32 0.00390625, %v637_v9  ;;  %v635_v14 = vpop.xlane.xlu0 %634  ;;  %v147_v56 = vld [vmem:[#allocation2 + $0x3c8] sm:$0xff] }
  0xb1   :  { %v2058_v17 = vsel %vm997_vm0, %v1420_v6, %v1416_v8  ;;  %v778_v18 = vmul.f32 0.00390625, %v635_v14  ;;  %v324_v6 = vadd.f32 %v111_v60, %v110_v59  ;;  %v209_v8 = vld [vmem:[#allocation2 + $0x5b8] sm:$0xff]  ;;  %v112_v59 = vld [vmem:[#allocation2 + $0x2b0] sm:$0xff] }
  0xb2   :  { %v1578_v19 = vrot.slane %v779_v13, %v2043_v42  ;;  %526 = vadd.xlane.f32.xlu1 %v340_v7  ;;  %v208_v7 = vld [vmem:[#allocation2 + $0x5b0] sm:$0xff]  ;;  %v113_v60 = vld [vmem:[#allocation2 + $0x2b8] sm:$0xff] }
  0xb3   :  { %v1574_v21 = vrot.slane %v778_v18, %v2040_v40  ;;  %492 = vadd.xlane.f32.xlu0 %v323_v10  ;;  %v413_v22 = vpop.xlane.xlu1 %412  ;;  %v373_v16 = vadd.f32 %v209_v8, %v208_v7 }
  0xb4   :  { %v667_v28 = vmul.f32 0.00390625, %v413_v22  ;;  %v411_v29 = vpop.xlane.xlu0 %410 }
  0xb5   :  { %v2064_v33 = vsel %vm997_vm0, %v1578_v19, %v1574_v21  ;;  %v666_v34 = vmul.f32 0.00390625, %v411_v29  ;;  %v272_v21 = vld [vmem:[#allocation2 + $0x7b0] sm:$0xff]  ;;  %v1006_v29 = vadd.s32 4294967272, %v2033_v27 }
  0xb6   :  { %v996_v35 = vrot.slane %v667_v28, %v2043_v42  ;;  %590 = vadd.xlane.f32.xlu1 %v372_v20  ;;  %v356_v20 = vadd.f32 %v175_v12, %v174_v11 }
  0xb7   :  { %v991_v37 = vrot.slane %v666_v34, %v2040_v40  ;;  %556 = vadd.xlane.f32.xlu0 %v355_v23  ;;  %v475_v38 = vpop.xlane.xlu1 %474  ;;  %v238_v23 = vld [vmem:[#allocation2 + $0x6a0] sm:$0xff] }
  0xb8   :  { %v447_v45 = vpop.xlane.xlu0 %446  ;;  %v698_v51 = vmul.f32 0.00390625, %v475_v38 }
  0xb9   :  { %v2072_v48 = vsel %vm997_vm0, %v996_v35, %v991_v37  ;;  %v684_v49 = vmul.f32 0.00390625, %v447_v45  ;;  %v388_v35 = vadd.f32 %v239_v24, %v238_v23  ;;  %v83_v37 = vld [vmem:[#allocation2 + $0x1c8] sm:$0xff]  ;;  %v241_v23 = vld [vmem:[#allocation2 + $0x6b8] sm:$0xff] }
  0xba   :  { %654 = vadd.xlane.f32.xlu1 %v404_v36  ;;  %v1179_v2 = vrot.slane %v698_v51, %v2040_v40  ;;  %v82_v36 = vld [vmem:[#allocation2 + $0x1c0] sm:$0xff] }
  0xbb   :  { %v1109_v52 = vrot.slane %v684_v49, %v2069_v39  ;;  %620 = vadd.xlane.f32.xlu0 %v387_v41  ;;  %v511_v53 = vpop.xlane.xlu1 %510  ;;  %v2102_v49 = vsub.s32 %v1006_v29, %v2035_v30 }
  0xbc   :  { %v716_v57 = vmul.f32 0.00390625, %v511_v53  ;;  %v477_v58 = vpop.xlane.xlu0 %476 }
  0xbd   :  { %v2077_v61 = vsel %vm1004_vm1, %v1109_v52, %v2053_v4  ;;  %v699_v62 = vmul.f32 0.00390625, %v477_v58 }
  0xbe   :  { %v1267_v0 = vrot.slane %v716_v57, %v2069_v39  ;;  %464 = vadd.xlane.f32.xlu1 %v309_v50  ;;  %v310_v50 = vadd.f32 %v83_v37, %v82_v36  ;;  %v85_v36 = vld [vmem:[#allocation2 + $0x1d8] sm:$0xff] }
  0xbf   :  { %v1183_v3 = vrot.slane %v699_v62, %v2043_v42  ;;  %430 = vadd.xlane.f32.xlu0 %v292_v54  ;;  %v541_v5 = vpop.xlane.xlu1 %540  ;;  %v293_v54 = vadd.f32 %v49_v44, %v48_v43  ;;  %v51_v43 = vld [vmem:[#allocation2 + $0xc8] sm:$0xff] }
  0xc0   :  { %v2084_v9 = vsel %vm1004_vm1, %v1267_v0, %v2050_v63  ;;  %v731_v4 = vmul.f32 0.00390625, %v541_v5  ;;  %v539_v10 = vpop.xlane.xlu0 %538  ;;  %v273_v63 = vld [vmem:[#allocation2 + $0x7b8] sm:$0xff]  ;;  %v342_v0 = vadd.f32 %v147_v56, %v146_v55  ;;  %v211_v5 = vld [vmem:[#allocation2 + $0x5c8] sm:$0xff] }
  0xc1   :  { %v2087_v13 = vsel %vm997_vm0, %v1183_v3, %v1179_v2  ;;  %v730_v14 = vmul.f32 0.00390625, %v539_v10  ;;  %v405_v28 = vadd.f32 %v273_v63, %v272_v21  ;;  %v325_v3 = vadd.f32 %v113_v60, %v112_v59  ;;  %v177_v10 = vld [vmem:[#allocation2 + $0x4b8] sm:$0xff]  ;;  %v115_v59 = vld [vmem:[#allocation2 + $0x2c8] sm:$0xff] }
  0xc2   :  { %v1341_v15 = vrot.slane %v731_v4, %v2043_v42  ;;  %528 = vadd.xlane.f32.xlu1 %v341_v1  ;;  %v176_v4 = vld [vmem:[#allocation2 + $0x4b0] sm:$0xff]  ;;  %v149_v55 = vld [vmem:[#allocation2 + $0x3d8] sm:$0xff] }
  0xc3   :  { %v1337_v18 = vrot.slane %v730_v14, %v2040_v40  ;;  %494 = vadd.xlane.f32.xlu0 %v324_v6  ;;  %v603_v19 = vpop.xlane.xlu1 %602 }
  0xc4   :  { %v575_v22 = vpop.xlane.xlu0 %574  ;;  %v762_v31 = vmul.f32 0.00390625, %v603_v19  ;;  %v357_v19 = vadd.f32 %v177_v10, %v176_v4 }
  0xc5   :  { %v2092_v25 = vsel %vm997_vm0, %v1341_v15, %v1337_v18  ;;  %v748_v26 = vmul.f32 0.00390625, %v575_v22 }
  0xc6   :  { %592 = vadd.xlane.f32.xlu1 %v373_v16  ;;  %v1495_v51 = vrot.slane %v762_v31, %v2040_v40  ;;  %v1013_v31 = vadd.s32 4294967264, %v2033_v27 }
  0xc7   :  { %v1425_v32 = vrot.slane %v748_v26, %v2069_v39  ;;  %558 = vadd.xlane.f32.xlu0 %v356_v20  ;;  %v639_v34 = vpop.xlane.xlu1 %638  ;;  %v275_v20 = vld [vmem:[#allocation2 + $0x7c8] sm:$0xff] }
  0xc8   :  { %v780_v38 = vmul.f32 0.00390625, %v639_v34  ;;  %v605_v41 = vpop.xlane.xlu0 %604 }
  0xc9   :  { %v2098_v45 = vsel %vm1004_vm1, %v1425_v32, %v2058_v17  ;;  %v763_v46 = vmul.f32 0.00390625, %v605_v41  ;;  %v50_v41 = vld [vmem:[#allocation2 + $0xc0] sm:$0xff] }
  0xca   :  { %v1583_v47 = vrot.slane %v780_v38, %v2069_v39  ;;  %656 = vadd.xlane.f32.xlu1 %v405_v28 }
  0xcb   :  { %v1499_v52 = vrot.slane %v763_v46, %v2043_v42  ;;  %622 = vadd.xlane.f32.xlu0 %v388_v35  ;;  %v449_v53 = vpop.xlane.xlu1 %448  ;;  %v84_v35 = vld [vmem:[#allocation2 + $0x1d0] sm:$0xff] }
  0xcc   :  { %v2108_v17 = vsel %vm1004_vm1, %v1583_v47, %v2064_v33  ;;  %v685_v57 = vmul.f32 0.00390625, %v449_v53  ;;  %v415_v58 = vpop.xlane.xlu0 %414  ;;  %v210_v33 = vld [vmem:[#allocation2 + $0x5c0] sm:$0xff]  ;;  %v294_v53 = vadd.f32 %v51_v43, %v50_v41 }
  0xcd   :  { %v2111_v62 = vsel %vm997_vm0, %v1499_v52, %v1495_v51  ;;  %v668_v40 = vmul.f32 0.00390625, %v415_v58  ;;  %v374_v15 = vadd.f32 %v211_v5, %v210_v33  ;;  %v311_v51 = vadd.f32 %v85_v36, %v84_v35  ;;  %v114_v58 = vld [vmem:[#allocation2 + $0x2c0] sm:$0xff] }
  0xce   :  { %v1114_v42 = vrot.slane %v685_v57, %v2102_v49  ;;  %466 = vadd.xlane.f32.xlu1 %v310_v50  ;;  %v2146_v50 = vsub.s32 %v1013_v31, %v2035_v30  ;;  %vm1799_vm0 = vcmask 58368  }
  0xcf   :  { %v1003_v1 = vrot.slane %v668_v40, %v2069_v39  ;;  %432 = vadd.xlane.f32.xlu0 %v293_v54  ;;  %v513_v2 = vpop.xlane.xlu1 %512  ;;  %v148_v54 = vld [vmem:[#allocation2 + $0x3d0] sm:$0xff] }
  0xd0   :  { %v2117_v6 = vsel %vm1011_vm2, %v1114_v42, %v2077_v61  ;;  %v717_v7 = vmul.f32 0.00390625, %v513_v2  ;;  %v479_v8 = vpop.xlane.xlu0 %478  ;;  %v274_v61 = vld [vmem:[#allocation2 + $0x7c0] sm:$0xff]  ;;  %v343_v42 = vadd.f32 %v149_v55, %v148_v54  ;;  %v212_v2 = vld [vmem:[#allocation2 + $0x5d0] sm:$0xff]  ;;  %v151_v54 = vld [vmem:[#allocation2 + $0x3e8] sm:$0xff] }
  0xd1   :  { %v2121_v11 = vsel %vm1004_vm1, %v1003_v1, %v2072_v48  ;;  %v700_v12 = vmul.f32 0.00390625, %v479_v8  ;;  %v240_v48 = vld [vmem:[#allocation2 + $0x6b0] sm:$0xff]  ;;  %v406_v29 = vadd.f32 %v275_v20, %v274_v61  ;;  %v179_v8 = vld [vmem:[#allocation2 + $0x4c8] sm:$0xff] }
  0xd2   :  { %v1272_v14 = vrot.slane %v717_v7, %v2102_v49  ;;  %530 = vadd.xlane.f32.xlu1 %v342_v0  ;;  %v389_v34 = vadd.f32 %v241_v23, %v240_v48  ;;  %v178_v7 = vld [vmem:[#allocation2 + $0x4c0] sm:$0xff] }
  0xd3   :  { %v1188_v16 = vrot.slane %v700_v12, %v2069_v39  ;;  %496 = vadd.xlane.f32.xlu0 %v325_v3  ;;  %v577_v18 = vpop.xlane.xlu1 %576  ;;  %v213_v3 = vld [vmem:[#allocation2 + $0x5d8] sm:$0xff] }
  0xd4   :  { %v2127_v21 = vsel %vm1011_vm2, %v1272_v14, %v2084_v9  ;;  %v749_v63 = vmul.f32 0.00390625, %v577_v18  ;;  %v543_v22 = vpop.xlane.xlu0 %542  ;;  %v375_v14 = vadd.f32 %v213_v3, %v212_v2  ;;  %v358_v18 = vadd.f32 %v179_v8, %v178_v7 }
  0xd5   :  { %v2131_v24 = vsel %vm1004_vm1, %v1188_v16, %v2087_v13  ;;  %v732_v26 = vmul.f32 0.00390625, %v543_v22  ;;  %v243_v22 = vld [vmem:[#allocation2 + $0x6c8] sm:$0xff] }
  0xd6   :  { %v1430_v28 = vrot.slane %v749_v63, %v2102_v49  ;;  %594 = vadd.xlane.f32.xlu1 %v374_v15 }
  0xd7   :  { %v1346_v32 = vrot.slane %v732_v26, %v2069_v39  ;;  %560 = vadd.xlane.f32.xlu0 %v357_v19  ;;  %v641_v9 = vpop.xlane.xlu1 %640  ;;  %v277_v19 = vld [vmem:[#allocation2 + $0x7d8] sm:$0xff] }
  0xd8   :  { %v2138_v37 = vsel %vm1011_vm2, %v1430_v28, %v2098_v45  ;;  %v781_v13 = vmul.f32 0.00390625, %v641_v9  ;;  %v607_v38 = vpop.xlane.xlu0 %606  ;;  %v86_v9 = vld [vmem:[#allocation2 + $0x1e0] sm:$0xff] }
  0xd9   :  { %v2142_v44 = vsel %vm1004_vm1, %v1346_v32, %v2092_v25  ;;  %v764_v46 = vmul.f32 0.00390625, %v607_v38  ;;  %v53_v38 = vld [vmem:[#allocation2 + $0xd8] sm:$0xff] }
  0xda   :  { %v1588_v47 = vrot.slane %v781_v13, %v2102_v49  ;;  %658 = vadd.xlane.f32.xlu1 %v406_v29  ;;  %v1020_v29 = vadd.s32 4294967256, %v2033_v27  ;;  %v52_v13 = vld [vmem:[#allocation2 + $0xd0] sm:$0xff] }
  0xdb   :  { %v1504_v52 = vrot.slane %v764_v46, %v2069_v39  ;;  %624 = vadd.xlane.f32.xlu0 %v389_v34  ;;  %v451_v45 = vpop.xlane.xlu1 %450  ;;  %v87_v34 = vld [vmem:[#allocation2 + $0x1e8] sm:$0xff] }
  0xdc   :  { %v2151_v56 = vsel %vm1011_vm2, %v1588_v47, %v2108_v17  ;;  %v686_v25 = vmul.f32 0.00390625, %v451_v45  ;;  %v417_v57 = vpop.xlane.xlu0 %416  ;;  %v326_v17 = vadd.f32 %v115_v59, %v114_v58  ;;  %v2190_v47 = vsub.s32 %v1020_v29, %v2035_v30  ;;  %v117_v58 = vld [vmem:[#allocation2 + $0x2d8] sm:$0xff] }
  0xdd   :  { %v2155_v60 = vsel %vm1004_vm1, %v1504_v52, %v2111_v62  ;;  %v669_v40 = vmul.f32 0.00390625, %v417_v57  ;;  %v295_v45 = vadd.f32 %v53_v38, %v52_v13  ;;  %v116_v57 = vld [vmem:[#allocation2 + $0x2d0] sm:$0xff] }
  0xde   :  { %v1119_v39 = vrot.slane %v686_v25, %v2146_v50  ;;  %468 = vadd.xlane.f32.xlu1 %v311_v51  ;;  %v312_v51 = vadd.f32 %v87_v34, %v86_v9 }
  0xdf   :  { %v1010_v0 = vrot.slane %v669_v40, %v2102_v49  ;;  %434 = vadd.xlane.f32.xlu0 %v294_v53  ;;  %v515_v1 = vpop.xlane.xlu1 %514  ;;  %v150_v53 = vld [vmem:[#allocation2 + $0x3e0] sm:$0xff] }
  0xe0   :  { %v2161_v33 = vsel %vm1018_vm3, %v1119_v39, %v2117_v6  ;;  %v718_v5 = vmul.f32 0.00390625, %v515_v1  ;;  %v481_v62 = vpop.xlane.xlu0 %480  ;;  %v276_v6 = vld [vmem:[#allocation2 + $0x7d0] sm:$0xff]  ;;  %v344_v39 = vadd.f32 %v151_v54, %v150_v53  ;;  %v214_v1 = vld [vmem:[#allocation2 + $0x5e0] sm:$0xff]  ;;  %v153_v53 = vld [vmem:[#allocation2 + $0x3f8] sm:$0xff] }
  0xe1   :  { %v2165_v4 = vsel %vm1011_vm2, %v1010_v0, %v2121_v11  ;;  %v701_v10 = vmul.f32 0.00390625, %v481_v62  ;;  %v242_v11 = vld [vmem:[#allocation2 + $0x6c0] sm:$0xff]  ;;  %v407_v28 = vadd.f32 %v277_v19, %v276_v6  ;;  %v181_v62 = vld [vmem:[#allocation2 + $0x4d8] sm:$0xff] }
  0xe2   :  { %v1277_v12 = vrot.slane %v718_v5, %v2146_v50  ;;  %532 = vadd.xlane.f32.xlu1 %v343_v42  ;;  %v390_v32 = vadd.f32 %v243_v22, %v242_v11  ;;  %v180_v5 = vld [vmem:[#allocation2 + $0x4d0] sm:$0xff] }
  0xe3   :  { %v1193_v15 = vrot.slane %v701_v10, %v2102_v49  ;;  %498 = vadd.xlane.f32.xlu0 %v326_v17  ;;  %v579_v16 = vpop.xlane.xlu1 %578  ;;  %v215_v17 = vld [vmem:[#allocation2 + $0x5e8] sm:$0xff] }
  0xe4   :  { %v2171_v61 = vsel %vm1018_vm3, %v1277_v12, %v2127_v21  ;;  %v750_v20 = vmul.f32 0.00390625, %v579_v16  ;;  %v545_v63 = vpop.xlane.xlu0 %544  ;;  %v376_v12 = vadd.f32 %v215_v17, %v214_v1  ;;  %v359_v16 = vadd.f32 %v181_v62, %v180_v5 }
  0xe5   :  { %v2175_v48 = vsel %vm1011_vm2, %v1193_v15, %v2131_v24  ;;  %v733_v23 = vmul.f32 0.00390625, %v545_v63  ;;  %v245_v63 = vld [vmem:[#allocation2 + $0x6d8] sm:$0xff] }
  0xe6   :  { %v1435_v26 = vrot.slane %v750_v20, %v2146_v50  ;;  %596 = vadd.xlane.f32.xlu1 %v375_v14 }
  0xe7   :  { %v1351_v31 = vrot.slane %v733_v23, %v2102_v49  ;;  %562 = vadd.xlane.f32.xlu0 %v358_v18  ;;  %v643_v21 = vpop.xlane.xlu1 %642  ;;  %v279_v18 = vld [vmem:[#allocation2 + $0x7e8] sm:$0xff] }
  0xe8   :  { %v2182_v35 = vsel %vm1018_vm3, %v1435_v26, %v2138_v37  ;;  %v782_v24 = vmul.f32 0.00390625, %v643_v21  ;;  %v609_v36 = vpop.xlane.xlu0 %608  ;;  %v88_v21 = vld [vmem:[#allocation2 + $0x1f0] sm:$0xff] }
  0xe9   :  { %v2186_v41 = vsel %vm1011_vm2, %v1351_v31, %v2142_v44  ;;  %v765_v43 = vmul.f32 0.00390625, %v609_v36  ;;  %v55_v36 = vld [vmem:[#allocation2 + $0xe8] sm:$0xff] }
  0xea   :  { %v1593_v46 = vrot.slane %v782_v24, %v2146_v50  ;;  %660 = vadd.xlane.f32.xlu1 %v407_v28  ;;  %v1027_v28 = vadd.s32 4294967248, %v2033_v27  ;;  %v54_v24 = vld [vmem:[#allocation2 + $0xe0] sm:$0xff] }
  0xeb   :  { %v1509_v52 = vrot.slane %v765_v43, %v2102_v49  ;;  %626 = vadd.xlane.f32.xlu0 %v390_v32  ;;  %v453_v37 = vpop.xlane.xlu1 %452  ;;  %v89_v32 = vld [vmem:[#allocation2 + $0x1f8] sm:$0xff] }
  0xec   :  { %v2195_v55 = vsel %vm1018_vm3, %v1593_v46, %v2151_v56  ;;  %v687_v44 = vmul.f32 0.00390625, %v453_v37  ;;  %v419_v25 = vpop.xlane.xlu0 %418  ;;  %v327_v56 = vadd.f32 %v117_v58, %v116_v57  ;;  %v2234_v46 = vsub.s32 %v1027_v28, %v2035_v30  ;;  %v119_v57 = vld [vmem:[#allocation2 + $0x2e8] sm:$0xff] }
  0xed   :  { %v2199_v59 = vsel %vm1011_vm2, %v1509_v52, %v2155_v60  ;;  %v670_v40 = vmul.f32 0.00390625, %v419_v25  ;;  %v296_v37 = vadd.f32 %v55_v36, %v54_v24  ;;  %v118_v25 = vld [vmem:[#allocation2 + $0x2e0] sm:$0xff]  ;;  %v827_v36 = vld [vmem:[%s2777_s1 + $0x108] sm:$0xff] }
  0xee   :  { %v1124_v49 = vrot.slane %v687_v44, %v2190_v47  ;;  %470 = vadd.xlane.f32.xlu1 %v312_v51  ;;  %v313_v51 = vadd.f32 %v89_v32, %v88_v21  ;;  %v120_v32 = vld [vmem:[#allocation2 + $0x2f0] sm:$0xff]  ;;  %v826_v24 = vld [vmem:[%s2777_s1 + $0x100] sm:$0xff] }
  0xef   :  { %v1017_v42 = vrot.slane %v670_v40, %v2146_v50  ;;  %436 = vadd.xlane.f32.xlu0 %v295_v45  ;;  %v517_v0 = vpop.xlane.xlu1 %516  ;;  %v152_v45 = vld [vmem:[#allocation2 + $0x3f0] sm:$0xff] }
  0xf0   :  { %v2205_v2 = vsel %vm1025_vm4, %v1124_v49, %v2161_v33  ;;  %v719_v3 = vmul.f32 0.00390625, %v517_v0  ;;  %v483_v60 = vpop.xlane.xlu0 %482  ;;  %v278_v33 = vld [vmem:[#allocation2 + $0x7e0] sm:$0xff]  ;;  %v345_v49 = vadd.f32 %v153_v53, %v152_v45  ;;  %v216_v0 = vld [vmem:[#allocation2 + $0x5f0] sm:$0xff]  ;;  %v1920_v45 = vpack.c.bf16 %v827_v36, %v826_v24 }
  0xf1   :  { %v2209_v7 = vsel %vm1018_vm3, %v1017_v42, %v2165_v4  ;;  %v702_v8 = vmul.f32 0.00390625, %v483_v60  ;;  %v244_v4 = vld [vmem:[#allocation2 + $0x6d0] sm:$0xff]  ;;  %v408_v26 = vadd.f32 %v279_v18, %v278_v33  ;;  %v183_v60 = vld [vmem:[#allocation2 + $0x4e8] sm:$0xff]  ;;  %v246_v33 = vld [vmem:[#allocation2 + $0x6e0] sm:$0xff] }
  0xf2   :  { %v1282_v10 = vrot.slane %v719_v3, %v2190_v47  ;;  %534 = vadd.xlane.f32.xlu1 %v344_v39  ;;  %v391_v31 = vadd.f32 %v245_v63, %v244_v4  ;;  %v182_v3 = vld [vmem:[#allocation2 + $0x4e0] sm:$0xff]  ;;  %v247_v18 = vld [vmem:[#allocation2 + $0x6e8] sm:$0xff] }
  0xf3   :  { %v1198_v14 = vrot.slane %v702_v8, %v2146_v50  ;;  %500 = vadd.xlane.f32.xlu0 %v327_v56  ;;  %v581_v15 = vpop.xlane.xlu1 %580  ;;  %v217_v56 = vld [vmem:[#allocation2 + $0x5f8] sm:$0xff]  ;;  %v810_v4 = vld [vmem:[%s2777_s1 + $0x80] sm:$0xff]  ;;  %v811_v63 = vld [vmem:[%s2777_s1 + $0x88] sm:$0xff] }
  0xf4   :  { %v2215_v6 = vsel %vm1025_vm4, %v1282_v10, %v2171_v61  ;;  %v751_v19 = vmul.f32 0.00390625, %v581_v15  ;;  %v547_v20 = vpop.xlane.xlu0 %546  ;;  %v377_v10 = vadd.f32 %v217_v56, %v216_v0  ;;  %v1886_v28 = vpack.c.bf16 %v811_v63, %v810_v4  ;;  %v797_v0 = vld [vmem:[%s2777_s1 + $0x18] sm:$0xff]  ;;  %v846_v4 = vld [vmem:[%s2777_s1 + $0x1a0] sm:$0xff] }
  0xf5   :  { %v2219_v11 = vsel %vm1018_vm3, %v1198_v14, %v2175_v48  ;;  %v734_v22 = vmul.f32 0.00390625, %v547_v20 }
  0xf6   :  { %v1440_v23 = vrot.slane %v751_v19, %v2190_v47  ;;  %598 = vadd.xlane.f32.xlu1 %v376_v12  ;;  %v280_v12 = vld [vmem:[#allocation2 + $0x7f0] sm:$0xff]  ;;  %1887 = vmatprep.subr.bf16.mxu0 %v1886_v28  ;;  %v799_v28 = vld [vmem:[%s2777_s1 + $0x28] sm:$0xff] }
  0xf7   :  { %v1356_v29 = vrot.slane %v734_v22, %v2146_v50  ;;  %564 = vadd.xlane.f32.xlu0 %v359_v16  ;;  %v645_v61 = vpop.xlane.xlu1 %644  ;;  %v281_v16 = vld [vmem:[#allocation2 + $0x7f8] sm:$0xff]  ;;  %v842_v22 = vld [vmem:[%s2777_s1 + $0x180] sm:$0xff] }
  0xf8   :  { %v2226_v9 = vsel %vm1025_vm4, %v1440_v23, %v2182_v35  ;;  %v783_v48 = vmul.f32 0.00390625, %v645_v61  ;;  %v611_v34 = vpop.xlane.xlu0 %610  ;;  %v794_v61 = vld [vmem:[%s2777_s1] sm:$0xff] }
  0xf9   :  { %v2230_v13 = vsel %vm1018_vm3, %v1356_v29, %v2186_v41  ;;  %v766_v38 = vmul.f32 0.00390625, %v611_v34  ;;  %v843_v29 = vld [vmem:[%s2777_s1 + $0x188] sm:$0xff] }
  0xfa   :  { %v1598_v43 = vrot.slane %v783_v48, %v2190_v47  ;;  %662 = vadd.xlane.f32.xlu1 %v408_v26  ;;  %v1034_v26 = vadd.s32 4294967240, %v2033_v27  ;;  %v1918_v48 = vpack.c.bf16 %v843_v29, %v842_v22 }
  0xfb   :  { %v1514_v52 = vrot.slane %v766_v38, %v2146_v50  ;;  %628 = vadd.xlane.f32.xlu0 %v391_v31  ;;  %v455_v35 = vpop.xlane.xlu1 %454  ;;  %v795_v31 = vld [vmem:[%s2777_s1 + $0x8] sm:$0xff] }
  0xfc   :  { %v2239_v54 = vsel %vm1025_vm4, %v1598_v43, %v2195_v55  ;;  %v688_v41 = vmul.f32 0.00390625, %v455_v35  ;;  %v421_v44 = vpop.xlane.xlu0 %420  ;;  %v328_v55 = vadd.f32 %v119_v57, %v118_v25  ;;  %v1888_v34 = vpack.c.bf16 %v795_v31, %v794_v61  ;;  %v56_v35 = vld [vmem:[#allocation2 + $0xf0] sm:$0xff]  ;;  %1919 = vmatprep.subr.bf16.mxu1 %v1918_v48  ;;  %v813_v57 = vld [vmem:[%s2777_s1 + $0x98] sm:$0xff] }
  0xfd   :  { %v2243_v58 = vsel %vm1018_vm3, %v1514_v52, %v2199_v59  ;;  %v671_v40 = vmul.f32 0.00390625, %v421_v44  ;;  %v121_v52 = vld [vmem:[#allocation2 + $0x2f8] sm:$0xff]  ;;  %v812_v25 = vld [vmem:[%s2777_s1 + $0x90] sm:$0xff]  ;;  %1921 = vmatpush3.bf16.msra.mxu1 %v1920_v45 }
  0xfe   :  { %v1129_v50 = vrot.slane %v688_v41, %v2234_v46  ;;  %472 = vadd.xlane.f32.xlu1 %v313_v51  ;;  %v392_v51 = vadd.f32 %v247_v18, %v246_v33  ;;  %1889 = vmatpush3.bf16.msra.mxu0 %v1888_v34  ;;  %v329_v56 = vadd.f32 %v121_v52, %v120_v32  ;;  %v817_v52 = vld [vmem:[%s2777_s1 + $0xb8] sm:$0xff] }
  0xff   :  { %v1024_v39 = vrot.slane %v671_v40, %v2190_v47  ;;  %438 = vadd.xlane.f32.xlu0 %v296_v37  ;;  %v519_v42 = vpop.xlane.xlu1 %518  ;;  %v57_v37 = vld [vmem:[#allocation2 + $0xf8] sm:$0xff]  ;;  %v844_v40 = vld [vmem:[%s2777_s1 + $0x190] sm:$0xff] }
 0x100   :  { %v2249_v1 = vsel %vm1032_vm5, %v1129_v50, %v2205_v2  ;;  %v720_v17 = vmul.f32 0.00390625, %v519_v42  ;;  %v485_v59 = vpop.xlane.xlu0 %484  ;;  %v360_v2 = vadd.f32 %v183_v60, %v182_v3  ;;  %v845_v42 = vld [vmem:[%s2777_s1 + $0x198] sm:$0xff]  ;;  %v828_v60 = vld [vmem:[%s2777_s1 + $0x110] sm:$0xff] }
 0x101   :  { %v2253_v5 = vsel %vm1025_vm4, %v1024_v39, %v2209_v7  ;;  %v703_v62 = vmul.f32 0.00390625, %v485_v59  ;;  %v1890_v39 = vpack.c.bf16 %v813_v57, %v812_v25  ;;  %v1922_v59 = vpack.c.bf16 %v845_v42, %v844_v40  ;;  %v801_v25 = vld [vmem:[%s2777_s1 + $0x38] sm:$0xff] }
 0x102   :  { %v1287_v8 = vrot.slane %v720_v17, %v2234_v46  ;;  %536 = vadd.xlane.f32.xlu1 %v345_v49  ;;  %v2310_v49 = vsub.s32 %v1034_v26, %v2035_v30  ;;  %v248_v17 = vld [vmem:[#allocation2 + $0x6f0] sm:$0xff]  ;;  %v798_v26 = vld [vmem:[%s2777_s1 + $0x20] sm:$0xff] }
 0x103   :  { %v1203_v14 = vrot.slane %v703_v62, %v2190_v47  ;;  %502 = vadd.xlane.f32.xlu0 %v328_v55  ;;  %v583_v15 = vpop.xlane.xlu1 %582  ;;  %v796_v55 = vld [vmem:[%s2777_s1 + $0x10] sm:$0xff]  ;;  %v829_v62 = vld [vmem:[%s2777_s1 + $0x118] sm:$0xff]  ;;  %1891 = vmatprep.subr.bf16.mxu0 %v1890_v39  ;;  %v1896_v31 = vpack.c.bf16 %v799_v28, %v798_v26 }
 0x104   :  { %v2259_v19 = vsel %vm1032_vm5, %v1287_v8, %v2215_v6  ;;  %v752_v7 = vmul.f32 0.00390625, %v583_v15  ;;  %v549_v20 = vpop.xlane.xlu0 %548  ;;  %v1892_v3 = vpack.c.bf16 %v797_v0, %v796_v55  ;;  %v184_v15 = vld [vmem:[#allocation2 + $0x4f0] sm:$0xff]  ;;  %1923 = vmatprep.subr.bf16.mxu1 %v1922_v59  ;;  %v833_v39 = vld [vmem:[%s2777_s1 + $0x138] sm:$0xff]  ;;  %v818_v59 = vld [vmem:[%s2777_s1 + $0xc0] sm:$0xff] }
 0x105   :  { %v2272_v23 = vsel %vm1025_vm4, %v1203_v14, %v2219_v11  ;;  %v735_v6 = vmul.f32 0.00390625, %v549_v20  ;;  %v409_v11 = vadd.f32 %v281_v16, %v280_v12  ;;  %v297_v12 = vadd.f32 %v57_v37, %v56_v35  ;;  %v249_v14 = vld [vmem:[#allocation2 + $0x6f8] sm:$0xff]  ;;  %v815_v20 = vld [vmem:[%s2777_s1 + $0xa8] sm:$0xff]  ;;  %v848_v35 = vld [vmem:[%s2777_s1 + $0x1b0] sm:$0xff] }
 0x106   :  { %v1445_v21 = vrot.slane %v752_v7, %v2234_v46  ;;  %600 = vadd.xlane.f32.xlu1 %v377_v10  ;;  %v1924_v16 = vpack.c.bf16 %v829_v62, %v828_v60  ;;  %1893 = vmatpush3.bf16.msra.mxu0 %v1892_v3  ;;  %v819_v3 = vld [vmem:[%s2777_s1 + $0xc8] sm:$0xff]  ;;  %v850_v60 = vld [vmem:[%s2777_s1 + $0x1c0] sm:$0xff]  ;;  %v820_v26 = vld [vmem:[%s2777_s1 + $0xd0] sm:$0xff] }
 0x107   :  { %v1361_v38 = vrot.slane %v735_v6, %v2190_v47  ;;  %566 = vadd.xlane.f32.xlu0 %v360_v2  ;;  %v647_v43 = vpop.xlane.xlu1 %646  ;;  %v185_v2 = vld [vmem:[#allocation2 + $0x4f8] sm:$0xff]  ;;  %v847_v6 = vld [vmem:[%s2777_s1 + $0x1a8] sm:$0xff] }
 0x108   :  { %v2294_v53 = vsel %vm1032_vm5, %v1445_v21, %v2226_v9  ;;  %v784_v41 = vmul.f32 0.00390625, %v647_v43  ;;  %v613_v44 = vpop.xlane.xlu0 %612  ;;  %1925 = vmatpush3.bf16.msra.mxu1 %v1924_v16  ;;  %v1926_v61 = vpack.c.bf16 %v847_v6, %v846_v4  ;;  %v830_v21 = vld [vmem:[%s2777_s1 + $0x120] sm:$0xff]  ;;  %v361_v34 = vadd.f32 %v185_v2, %v184_v15  ;;  %v821_v28 = vld [vmem:[%s2777_s1 + $0xd8] sm:$0xff] }
 0x109   :  { %v2307_v9 = vsel %vm1025_vm4, %v1361_v38, %v2230_v13  ;;  %v767_v50 = vmul.f32 0.00390625, %v613_v44  ;;  %v800_v44 = vld [vmem:[%s2777_s1 + $0x30] sm:$0xff] }
 0x10a   :  { %v1603_v13 = vrot.slane %v784_v41, %v2234_v46  ;;  %664 = vadd.xlane.f32.xlu1 %v409_v11  ;;  %v831_v11 = vld [vmem:[%s2777_s1 + $0x128] sm:$0xff]  ;;  %1927 = vmatprep.subr.bf16.mxu1 %v1926_v61  ;;  %v849_v41 = vld [vmem:[%s2777_s1 + $0x1b8] sm:$0xff]  ;;  %v1900_v40 = vpack.c.bf16 %v801_v25, %v800_v44  ;;  %v1906_v61 = vpack.c.bf16 %v821_v28, %v820_v26 }
 0x10b   :  { %v1519_v8 = vrot.slane %v767_v50, %v2190_v47  ;;  %630 = vadd.xlane.f32.xlu0 %v392_v51  ;;  %v457_v10 = vpop.xlane.xlu1 %456  ;;  %v814_v47 = vld [vmem:[%s2777_s1 + $0xa0] sm:$0xff]  ;;  %v1928_v24 = vpack.c.bf16 %v831_v11, %v830_v21  ;;  %v816_v51 = vld [vmem:[%s2777_s1 + $0xb0] sm:$0xff]  ;;  %v805_v11 = vld [vmem:[%s2777_s1 + $0x58] sm:$0xff] }
 0x10c   :  { %v2331_v33 = vsel %vm1032_vm5, %v1603_v13, %v2239_v54  ;;  %v689_v18 = vmul.f32 0.00390625, %v457_v10  ;;  %v423_v7 = vpop.xlane.xlu0 %422  ;;  %v1894_v22 = vpack.c.bf16 %v815_v20, %v814_v47  ;;  %v1898_v45 = vpack.c.bf16 %v817_v52, %v816_v51  ;;  %v832_v50 = vld [vmem:[%s2777_s1 + $0x130] sm:$0xff]  ;;  %v851_v10 = vld [vmem:[%s2777_s1 + $0x1c8] sm:$0xff] }
 0x10d   :  { %v2344_v54 = vsel %vm1025_vm4, %v1519_v8, %v2243_v58  ;;  %v672_v63 = vmul.f32 0.00390625, %v423_v7  ;;  %v393_v58 = vadd.f32 %v249_v14, %v248_v17  ;;  %1929 = vmatpush3.bf16.msra.mxu1 %v1928_v24  ;;  %v1932_v0 = vpack.c.bf16 %v833_v39, %v832_v50  ;;  %v803_v14 = vld [vmem:[%s2777_s1 + $0x48] sm:$0xff]  ;;  %v804_v21 = vld [vmem:[%s2777_s1 + $0x50] sm:$0xff] }
 0x10e   :  { %v1134_v29 = vrot.slane %v689_v18, %v2310_v49  ;;  %504 = vadd.xlane.f32.xlu1 %v329_v56  ;;  %1895 = vmatprep.subr.bf16.mxu0 %v1894_v22  ;;  %v1902_v8 = vpack.c.bf16 %v819_v3, %v818_v59  ;;  %v1934_v2 = vpack.c.bf16 %v851_v10, %v850_v60  ;;  %v834_v18 = vld [vmem:[%s2777_s1 + $0x140] sm:$0xff]  ;;  %v835_v7 = vld [vmem:[%s2777_s1 + $0x148] sm:$0xff]  ;;  %v836_v24 = vld [vmem:[%s2777_s1 + $0x150] sm:$0xff] }
 0x10f   :  { %v1031_v32 = vrot.slane %v672_v63, %v2234_v46  ;;  %440 = vadd.xlane.f32.xlu0 %v297_v12  ;;  %v521_v48 = vpop.xlane.xlu1 %520  ;;  %1897 = vmatpush3.bf16.msra.mxu0 %v1896_v31  ;;  %v802_v12 = vld [vmem:[%s2777_s1 + $0x40] sm:$0xff]  ;;  %v1936_v4 = vpack.c.bf16 %v835_v7, %v834_v18  ;;  %v853_v31 = vld [vmem:[%s2777_s1 + $0x1d8] sm:$0xff]  ;;  %v823_v44 = vld [vmem:[%s2777_s1 + $0xe8] sm:$0xff] }
 0x110   :  { %v2365_v36 = vsel %vm1039_vm6, %v1134_v29, %v2249_v1  ;;  %v721_v38 = vmul.f32 0.00390625, %v521_v48  ;;  %v487_v43 = vpop.xlane.xlu0 %486  ;;  %1899 = vmatprep.subr.bf16.mxu0 %v1898_v45  ;;  %v1904_v16 = vpack.c.bf16 %v803_v14, %v802_v12  ;;  %v852_v29 = vld [vmem:[%s2777_s1 + $0x1d0] sm:$0xff]  ;;  %v807_v50 = vld [vmem:[%s2777_s1 + $0x68] sm:$0xff]  ;;  %v825_v10 = vld [vmem:[%s2777_s1 + $0xf8] sm:$0xff] }
 0x111   :  { %v2378_v1 = vsel %vm1032_vm5, %v1031_v32, %v2253_v5  ;;  %v704_v37 = vmul.f32 0.00390625, %v487_v43  ;;  %v1930_v5 = vpack.c.bf16 %v849_v41, %v848_v35  ;;  %v1938_v48 = vpack.c.bf16 %v853_v31, %v852_v29  ;;  %v822_v41 = vld [vmem:[%s2777_s1 + $0xe0] sm:$0xff]  ;;  %v856_v12 = vld [vmem:[%s2777_s1 + $0x1f0] sm:$0xff] }
 0x112   :  { %v1292_v57 = vrot.slane %v721_v38, %v2310_v49  ;;  %632 = vadd.xlane.f32.xlu1 %v393_v58  ;;  %v837_v38 = vld [vmem:[%s2777_s1 + $0x158] sm:$0xff] }
 0x113   :  { %v1208_v42 = vrot.slane %v704_v37, %v2234_v46  ;;  %568 = vadd.xlane.f32.xlu0 %v361_v34  ;;  %v585_v55 = vpop.xlane.xlu1 %584  ;;  %1931 = vmatprep.subr.bf16.mxu1 %v1930_v5  ;;  %v1908_v34 = vpack.c.bf16 %v805_v11, %v804_v21  ;;  %v1940_v52 = vpack.c.bf16 %v837_v38, %v836_v24  ;;  %v855_v5 = vld [vmem:[%s2777_s1 + $0x1e8] sm:$0xff]  ;;  %v1048_v21 = vadd.s32 4294967224, %v2033_v27 }
 0x114   :  { %v2399_v13 = vsel %vm1039_vm6, %v1292_v57, %v2259_v19  ;;  %v753_v56 = vmul.f32 0.00390625, %v585_v55  ;;  %v551_v17 = vpop.xlane.xlu0 %550  ;;  %1901 = vmatpush3.bf16.msra.mxu0 %v1900_v40  ;;  %1933 = vmatpush3.bf16.msra.mxu1 %v1932_v0  ;;  %v1910_v57 = vpack.c.bf16 %v823_v44, %v822_v41  ;;  %v806_v40 = vld [vmem:[%s2777_s1 + $0x60] sm:$0xff]  ;;  %v839_v0 = vld [vmem:[%s2777_s1 + $0x168] sm:$0xff] }
 0x115   :  { %v2412_v19 = vsel %vm1032_vm5, %v1208_v42, %v2272_v23  ;;  %v736_v62 = vmul.f32 0.00390625, %v551_v17  ;;  %v1041_v23 = vadd.s32 4294967232, %v2033_v27  ;;  %1903 = vmatprep.subr.bf16.mxu0 %v1902_v8  ;;  %1935 = vmatprep.subr.bf16.mxu1 %v1934_v2  ;;  %v1912_v42 = vpack.c.bf16 %v807_v50, %v806_v40  ;;  %v838_v55 = vld [vmem:[%s2777_s1 + $0x160] sm:$0xff]  ;;  %v824_v8 = vld [vmem:[%s2777_s1 + $0xf0] sm:$0xff] }
 0x116   :  { %v1450_v15 = vrot.slane %v753_v56, %v2310_v49  ;;  %v1944_v59 = vpack.c.bf16 %v839_v0, %v838_v55  ;;  %v808_v2 = vld [vmem:[%s2777_s1 + $0x70] sm:$0xff] }
 0x117   :  { %v1366_v47 = vrot.slane %v736_v62, %v2234_v46  ;;  %v649_v20 = vpop.xlane.xlu1 %648 }
 0x118   :  { %v2434_v63 = vsel %vm1039_vm6, %v1450_v15, %v2294_v53  ;;  %v785_v22 = vmul.f32 0.00390625, %v649_v20  ;;  %v615_v6 = vpop.xlane.xlu0 %614  ;;  %1905 = vmatpush3.bf16.msra.mxu0 %v1904_v16  ;;  %1937 = vmatpush3.bf16.msra.mxu1 %v1936_v4  ;;  %v1914_v15 = vpack.c.bf16 %v825_v10, %v824_v8  ;;  %v809_v16 = vld [vmem:[%s2777_s1 + $0x78] sm:$0xff] }
 0x119   :  { %v2447_v53 = vsel %vm1032_vm5, %v1366_v47, %v2307_v9  ;;  %v768_v58 = vmul.f32 0.00390625, %v615_v6  ;;  %v2460_v9 = vsub.s32 %v1041_v23, %v2035_v30  ;;  %1907 = vmatprep.subr.bf16.mxu0 %v1906_v61  ;;  %1939 = vmatprep.subr.bf16.mxu1 %v1938_v48  ;;  %v857_v23 = vld [vmem:[%s2777_s1 + $0x1f8] sm:$0xff]  ;;  %v1916_v47 = vpack.c.bf16 %v809_v16, %v808_v2 }
 0x11a   :  { %v1608_v32 = vrot.slane %v785_v22, %v2310_v49  ;;  %v1946_v7 = vpack.c.bf16 %v857_v23, %v856_v12  ;;  %v841_v20 = vld [vmem:[%s2777_s1 + $0x178] sm:$0xff] }
 0x11b   :  { %v1524_v43 = vrot.slane %v768_v58, %v2234_v46  ;;  %v459_v51 = vpop.xlane.xlu1 %458  ;;  %v854_v46 = vld [vmem:[%s2777_s1 + $0x1e0] sm:$0xff] }
 0x11c   :  { %v2471_v35 = vsel %vm1039_vm6, %v1608_v32, %v2331_v33  ;;  %v690_v37 = vmul.f32 0.00390625, %v459_v51  ;;  %v425_v45 = vpop.xlane.xlu0 %424  ;;  %1909 = vmatpush3.bf16.msra.mxu0 %v1908_v34  ;;  %1941 = vmatpush3.bf16.msra.mxu1 %v1940_v52 }
 0x11d   :  { %v2484_v33 = vsel %vm1032_vm5, %v1524_v43, %v2344_v54  ;;  %v673_v25 = vmul.f32 0.00390625, %v425_v45  ;;  %v1942_v54 = vpack.c.bf16 %v855_v5, %v854_v46  ;;  %1911 = vmatprep.subr.bf16.mxu0 %v1910_v57  ;;  %v2546_v43 = vsub.s32 %v1048_v21, %v2035_v30 }
 0x11e   :  { %v1139_v39 = vrot.slane %v690_v37, %v2460_v9 }
 0x11f   :  { %v1038_v56 = vrot.slane %v673_v25, %v2310_v49  ;;  %v523_v17 = vpop.xlane.xlu1 %522  ;;  %1943 = vmatprep.subr.bf16.mxu1 %v1942_v54 }
 0x120   :  { %v1140_v3 = vsel %vm1046_vm7, %v1139_v39, %v2365_v36  ;;  %v722_v60 = vmul.f32 0.00390625, %v523_v17  ;;  %v489_v62 = vpop.xlane.xlu0 %488  ;;  %1913 = vmatpush3.bf16.msra.mxu0 %v1912_v42  ;;  %1945 = vmatpush3.bf16.msra.mxu1 %v1944_v59  ;;  %v1055_v59 = vadd.s32 4294967216, %v2033_v27 }
 0x121   :  { %v1040_v14 = vsel %vm1039_vm6, %v1038_v56, %v2378_v1  ;;  %v705_v36 = vmul.f32 0.00390625, %v489_v62  ;;  %v840_v1 = vld [vmem:[%s2777_s1 + $0x170] sm:$0xff]  ;;  %1915 = vmatprep.subr.bf16.mxu0 %v1914_v15  ;;  %1947 = vmatprep.subr.bf16.mxu1 %v1946_v7  ;;  %s2005_s1 = smov [#allocation5]  }
 0x122   :  { %v1297_v18 = vrot.slane %v722_v60, %v2460_v9  ;;  %v1948_v6 = vpack.c.bf16 %v841_v20, %v840_v1  ;;  %v2568_v15 = vsub.s32 %v1055_v59, %v2035_v30  ;;  %s1807_s6 = sshll.u32 %s2005_s1, 4  ;;  %s1808_s6 = int_to_ptr.vmem [resolvable:$true] %s1807_s6 }
 0x123   :  { %v1213_v4 = vrot.slane %v705_v36, %v2310_v49  ;;  %v587_v22 = vpop.xlane.xlu1 %586  ;;  %s1976_s7 = scalar_lea.vmem %s1808_s6, 32  ;;  %p1981_p9 = scmp.lt.s32.totalorder %s1808_s6, %s1808_s6 }
 0x124   :  { %v1298_v26 = vsel %vm1046_vm7, %v1297_v18, %v2399_v13  ;;  %v754_v28 = vmul.f32 0.00390625, %v587_v22  ;;  %v553_v29 = vpop.xlane.xlu0 %552  ;;  %1917 = vmatpush3.bf16.msra.mxu0 %v1916_v47  ;;  %1949 = vmatpush3.bf16.msra.mxu1 %v1948_v6  ;;  %p1977_p8 = scmp.ne.s32.totalorder %s1808_s6, %s1976_s7  ;;  %p1982_p10 = scmp.lt.s32.totalorder %s1976_s7, %s1976_s7 }
 0x125   :  { %v1214_v58 = vsel %vm1039_vm6, %v1213_v4, %v2412_v19  ;;  %v737_v61 = vmul.f32 0.00390625, %v553_v29 }
 0x126   :  { %v1455_v31 = vrot.slane %v754_v28, %v2460_v9  ;;  %p1983_p11 = por %p1982_p10, %p1981_p9 }
 0x127   :  { %v1371_v11 = vrot.slane %v737_v61, %v2310_v49  ;;  %v651_v32 = vpop.xlane.xlu1 %650 }
 0x128   :  { %v1456_v48 = vsel %vm1046_vm7, %v1455_v31, %v2434_v63  ;;  %v786_v13 = vmul.f32 0.00390625, %v651_v32  ;;  %v617_v34 = vpop.xlane.xlu0 %616  ;;  %p1984_p12 = pnand %p1983_p11, %p1977_p8 }
 0x129   :  { %v1372_v24 = vsel %vm1039_vm6, %v1371_v11, %v2447_v53  ;;  %v769_v38 = vmul.f32 0.00390625, %v617_v34 }
 0x12a   :  { %v1613_v19 = vrot.slane %v786_v13, %v2460_v9 }
 0x12b   :  { %v1529_v51 = vrot.slane %v769_v38, %v2310_v49  ;;  %v461_v52 = vpop.xlane.xlu1 %460 }
 0x12c   :  { %v1614_v37 = vsel %vm1046_vm7, %v1613_v19, %v2471_v35  ;;  %v691_v45 = vmul.f32 0.00390625, %v461_v52  ;;  %v427_v41 = vpop.xlane.xlu0 %426 }
 0x12d   :  { %v1530_v63 = vsel %vm1039_vm6, %v1529_v51, %v2484_v33  ;;  %v674_v44 = vmul.f32 0.00390625, %v427_v41 }
 0x12e   :  { %v1144_v53 = vrot.slane %v691_v45, %v2546_v43 }
 0x12f   :  { %v1045_v46 = vrot.slane %v674_v44, %v2460_v9  ;;  %v525_v25 = vpop.xlane.xlu1 %524 }
 0x130   :  { %v1145_v57 = vsel %vm1053_vm8, %v1144_v53, %v1140_v3  ;;  %v723_v5 = vmul.f32 0.00390625, %v525_v25  ;;  %v491_v49 = vpop.xlane.xlu0 %490 }
 0x131   :  { %v1047_v40 = vsel %vm1046_vm7, %v1045_v46, %v1040_v14  ;;  %v706_v50 = vmul.f32 0.00390625, %v491_v49 }
 0x132   :  { %v1302_v35 = vrot.slane %v723_v5, %v2546_v43 }
 0x133   :  { %v1218_v39 = vrot.slane %v706_v50, %v2460_v9  ;;  %v589_v54 = vpop.xlane.xlu1 %588 }
 0x134   :  { %v1303_v33 = vsel %vm1053_vm8, %v1302_v35, %v1298_v26  ;;  %v755_v42 = vmul.f32 0.00390625, %v589_v54  ;;  %v555_v55 = vpop.xlane.xlu0 %554 }
 0x135   :  { %v1219_v0 = vsel %vm1046_vm7, %v1218_v39, %v1214_v58  ;;  %v738_v56 = vmul.f32 0.00390625, %v555_v55 }
 0x136   :  { %v1460_v17 = vrot.slane %v755_v42, %v2546_v43 }
 0x137   :  { %v1376_v3 = vrot.slane %v738_v56, %v2460_v9  ;;  %v653_v60 = vpop.xlane.xlu1 %652 }
 0x138   :  { %v1461_v62 = vsel %vm1053_vm8, %v1460_v17, %v1456_v48  ;;  %v787_v8 = vmul.f32 0.00390625, %v653_v60  ;;  %v619_v10 = vpop.xlane.xlu0 %618 }
 0x139   :  { %v1377_v12 = vsel %vm1046_vm7, %v1376_v3, %v1372_v24  ;;  %v770_v14 = vmul.f32 0.00390625, %v619_v10  ;;  %v1062_v24 = vadd.s32 4294967208, %v2033_v27 }
 0x13a   :  { %v1618_v36 = vrot.slane %v787_v8, %v2546_v43 }
 0x13b   :  { %v1534_v23 = vrot.slane %v770_v14, %v2460_v9  ;;  %v463_v2 = vpop.xlane.xlu1 %462  ;;  %v2590_v44 = vsub.s32 %v1062_v24, %v2035_v30  ;;  %v1069_v24 = vadd.s32 4294967200, %v2033_v27 }
 0x13c   :  { %v1619_v16 = vsel %vm1053_vm8, %v1618_v36, %v1614_v37  ;;  %v692_v18 = vmul.f32 0.00390625, %v463_v2  ;;  %v429_v7 = vpop.xlane.xlu0 %428 }
 0x13d   :  { %v1535_v47 = vsel %vm1046_vm7, %v1534_v23, %v1530_v63  ;;  %v675_v1 = vmul.f32 0.00390625, %v429_v7 }
 0x13e   :  { %v1149_v20 = vrot.slane %v692_v18, %v2568_v15 }
 0x13f   :  { %v1052_v4 = vrot.slane %v675_v1, %v2546_v43  ;;  %v527_v22 = vpop.xlane.xlu1 %526 }
 0x140   :  { %v1150_v6 = vsel %vm1060_vm9, %v1149_v20, %v1145_v57  ;;  %v724_v26 = vmul.f32 0.00390625, %v527_v22  ;;  %v493_v28 = vpop.xlane.xlu0 %492 }
 0x141   :  { %v1054_v9 = vsel %vm1053_vm8, %v1052_v4, %v1047_v40  ;;  %v707_v29 = vmul.f32 0.00390625, %v493_v28 }
 0x142   :  { %v1307_v58 = vrot.slane %v724_v26, %v2568_v15 }
 0x143   :  { %v1223_v61 = vrot.slane %v707_v29, %v2546_v43  ;;  %v591_v31 = vpop.xlane.xlu1 %590 }
 0x144   :  { %v1308_v21 = vsel %vm1060_vm9, %v1307_v58, %v1303_v33  ;;  %v756_v11 = vmul.f32 0.00390625, %v591_v31  ;;  %v557_v32 = vpop.xlane.xlu0 %556 }
 0x145   :  { %v1224_v48 = vsel %vm1053_vm8, %v1223_v61, %v1219_v0  ;;  %v739_v13 = vmul.f32 0.00390625, %v557_v32 }
 0x146   :  { %v1465_v34 = vrot.slane %v756_v11, %v2568_v15 }
 0x147   :  { %v1381_v38 = vrot.slane %v739_v13, %v2546_v43  ;;  %v655_v19 = vpop.xlane.xlu1 %654 }
 0x148   :  { %v2585_v51 = vsel %vm1060_vm9, %v1465_v34, %v1461_v62  ;;  %v788_v52 = vmul.f32 0.00390625, %v655_v19  ;;  %v621_v37 = vpop.xlane.xlu0 %620 }
 0x149   :  { %v1382_v45 = vsel %vm1053_vm8, %v1381_v38, %v1377_v12  ;;  %v771_v41 = vmul.f32 0.00390625, %v621_v37 }
 0x14a   :  { %v1623_v63 = vrot.slane %v788_v52, %v2568_v15 }
 0x14b   :  { %v1539_v53 = vrot.slane %v771_v41, %v2546_v43  ;;  %v465_v46 = vpop.xlane.xlu1 %464 }
 0x14c   :  { %v2594_v25 = vsel %vm1060_vm9, %v1623_v63, %v1619_v16  ;;  %v693_v57 = vmul.f32 0.00390625, %v465_v46  ;;  %v431_v5 = vpop.xlane.xlu0 %430  ;;  %v1076_v63 = vadd.s32 4294967192, %v2033_v27  ;;  %v1083_v46 = vadd.s32 4294967184, %v2033_v27 }
 0x14d   :  { %v1540_v49 = vsel %vm1053_vm8, %v1539_v53, %v1535_v47  ;;  %v676_v40 = vmul.f32 0.00390625, %v431_v5 }
 0x14e   :  { %v1154_v50 = vrot.slane %v693_v57, %v2590_v44 }
 0x14f   :  { %v1059_v35 = vrot.slane %v676_v40, %v2568_v15  ;;  %v529_v39 = vpop.xlane.xlu1 %528 }
 0x150   :  { %v2600_v54 = vsel %vm1067_vm10, %v1154_v50, %v1150_v6  ;;  %v725_v33 = vmul.f32 0.00390625, %v529_v39  ;;  %v495_v43 = vpop.xlane.xlu0 %494  ;;  %v1090_v50 = vadd.s32 4294967176, %v2033_v27 }
 0x151   :  { %v1061_v42 = vsel %vm1060_vm9, %v1059_v35, %v1054_v9  ;;  %v708_v55 = vmul.f32 0.00390625, %v495_v43 }
 0x152   :  { %v1312_v0 = vrot.slane %v725_v33, %v2590_v44 }
 0x153   :  { %v1228_v56 = vrot.slane %v708_v55, %v2568_v15  ;;  %v593_v17 = vpop.xlane.xlu1 %592  ;;  %v2648_v55 = vsub.s32 %v1076_v63, %v2035_v30 }
 0x154   :  { %v2606_v59 = vsel %vm1067_vm10, %v1312_v0, %v1308_v21  ;;  %v559_v3 = vpop.xlane.xlu0 %558  ;;  %v757_v52 = vmul.f32 0.00390625, %v593_v17  ;;  %v2652_v17 = vsub.s32 %v1083_v46, %v2035_v30 }
 0x155   :  { %v2609_v60 = vsel %vm1060_vm9, %v1228_v56, %v1224_v48  ;;  %v740_v62 = vmul.f32 0.00390625, %v559_v3 }
 0x156   :  { %v1470_v35 = vrot.slane %v757_v52, %v2590_v44 }
 0x157   :  { %v1386_v8 = vrot.slane %v740_v62, %v2568_v15  ;;  %v657_v10 = vpop.xlane.xlu1 %656 }
 0x158   :  { %v623_v12 = vpop.xlane.xlu0 %622  ;;  %v789_v37 = vmul.f32 0.00390625, %v657_v10 }
 0x159   :  { %v2613_v14 = vsel %vm1060_vm9, %v1386_v8, %v1382_v45  ;;  %v772_v36 = vmul.f32 0.00390625, %v623_v12  ;;  %v2637_v45 = vsub.s32 %v1069_v24, %v2035_v30  ;;  %v2657_v8 = vsub.s32 %v1090_v50, %v2035_v30 }
 0x15a   :  { %v1628_v39 = vrot.slane %v789_v37, %v2590_v44  ;;  %v1471_v12 = vsel %vm1067_vm10, %v1470_v35, %v2585_v51 }
 0x15b   :  { %v1544_v23 = vrot.slane %v772_v36, %v2568_v15  ;;  %v467_v2 = vpop.xlane.xlu1 %466 }
 0x15c   :  { %v433_v16 = vpop.xlane.xlu0 %432  ;;  %v694_v41 = vmul.f32 0.00390625, %v467_v2  ;;  %v1629_v36 = vsel %vm1067_vm10, %v1628_v39, %v2594_v25 }
 0x15d   :  { %v2617_v18 = vsel %vm1060_vm9, %v1544_v23, %v1540_v49  ;;  %v677_v7 = vmul.f32 0.00390625, %v433_v16 }
 0x15e   :  { %v1159_v33 = vrot.slane %v694_v41, %v2637_v45 }
 0x15f   :  { %v1066_v47 = vrot.slane %v677_v7, %v2590_v44  ;;  %v531_v1 = vpop.xlane.xlu1 %530 }
 0x160   :  { %v497_v20 = vpop.xlane.xlu0 %496  ;;  %v726_v53 = vmul.f32 0.00390625, %v531_v1  ;;  %v1160_v16 = vsel %vm1074_vm11, %v1159_v33, %v2600_v54 }
 0x161   :  { %v2621_v4 = vsel %vm1067_vm10, %v1066_v47, %v1061_v42  ;;  %v709_v5 = vmul.f32 0.00390625, %v497_v20 }
 0x162   :  { %v1317_v0 = vrot.slane %v726_v53, %v2637_v45 }
 0x163   :  { %v595_v22 = vpop.xlane.xlu1 %594  ;;  %v1233_v3 = vrot.slane %v709_v5, %v2590_v44 }
 0x164   :  { %v561_v6 = vpop.xlane.xlu0 %560  ;;  %v758_v49 = vmul.f32 0.00390625, %v595_v22  ;;  %v1318_v1 = vsel %vm1074_vm11, %v1317_v0, %v2606_v59 }
 0x165   :  { %v741_v43 = vmul.f32 0.00390625, %v561_v6  ;;  %v2674_v6 = vsel %vm1067_vm10, %v1233_v3, %v2609_v60 }
 0x166   :  { %v1475_v62 = vrot.slane %v758_v49, %v2637_v45 }
 0x167   :  { %v659_v26 = vpop.xlane.xlu1 %658  ;;  %v1391_v7 = vrot.slane %v741_v43, %v2590_v44 }
 0x168   :  { %v625_v28 = vpop.xlane.xlu0 %624  ;;  %v790_v42 = vmul.f32 0.00390625, %v659_v26  ;;  %v1476_v54 = vsel %vm1074_vm11, %v1475_v62, %v1471_v12 }
 0x169   :  { %v773_v56 = vmul.f32 0.00390625, %v625_v28 }
 0x16a   :  { %v1633_v30 = vrot.slane %v790_v42, %v2637_v45 }
 0x16b   :  { %v469_v9 = vpop.xlane.xlu1 %468  ;;  %v1549_v51 = vrot.slane %v773_v56, %v2590_v44 }
 0x16c   :  { %v435_v29 = vpop.xlane.xlu0 %434  ;;  %v695_v23 = vmul.f32 0.00390625, %v469_v9  ;;  %v1634_v60 = vsel %vm1074_vm11, %v1633_v30, %v1629_v36 }
 0x16d   :  { %v2677_v26 = vmul.f32 0.00390625, %v435_v29 }
 0x16f   :  { %v533_v15 = vpop.xlane.xlu1 %532 }
 0x170   :  { %v2623_v58 = vpop.xlane.xlu0 %498  ;;  %v727_v2 = vmul.f32 0.00390625, %v533_v15  ;;  %v1164_v15 = vrot.slane %v695_v23, %v2648_v55 }
 0x171   :  { %v2682_v59 = vmul.f32 0.00390625, %v2623_v58 }
 0x172   :  { %v1165_v5 = vsel %vm1081_vm12, %v1164_v15, %v1160_v16 }
 0x173   :  { %v597_v61 = vpop.xlane.xlu1 %596 }
 0x174   :  { %v2625_v31 = vpop.xlane.xlu0 %562  ;;  %v759_v47 = vmul.f32 0.00390625, %v597_v61  ;;  %v1322_v61 = vrot.slane %v727_v2, %v2648_v55 }
 0x176   :  { %v1480_v24 = vrot.slane %v759_v47, %v2648_v55  ;;  %v1323_v49 = vsel %vm1081_vm12, %v1322_v61, %v1318_v1 }
 0x177   :  { %v661_v21 = vpop.xlane.xlu1 %660 }
 0x178   :  { %v2627_v11 = vpop.xlane.xlu0 %626  ;;  %v791_v44 = vmul.f32 0.00390625, %v661_v21  ;;  %v1073_v21 = vrot.slane %v2677_v26, %v2637_v45  ;;  %v1481_v39 = vsel %vm1081_vm12, %v1480_v24, %v1476_v54 }
 0x179   :  { %v774_v33 = vmul.f32 0.00390625, %v2627_v11 }
 0x17b   :  { %v471_v32 = vpop.xlane.xlu1 %470 }
 0x17c   :  { %v2629_v48 = vpop.xlane.xlu0 %436  ;;  %v696_v20 = vmul.f32 0.00390625, %v471_v32  ;;  %v2686_v32 = vsel %vm1067_vm10, %v1391_v7, %v2613_v14 }
 0x17d   :  { %v679_v36 = vmul.f32 0.00390625, %v2629_v48 }
 0x17e   :  { %v1169_v52 = vrot.slane %v696_v20, %v2652_v17 }
 0x17f   :  { %v535_v13 = vpop.xlane.xlu1 %534 }
 0x180   :  { %v2631_v34 = vpop.xlane.xlu0 %500  ;;  %v728_v29 = vmul.f32 0.00390625, %v535_v13  ;;  %v1238_v13 = vrot.slane %v2682_v59, %v2637_v45  ;;  %v1170_v0 = vsel %vm1088_vm13, %v1169_v52, %v1165_v5 }
 0x181   :  { %v711_v23 = vmul.f32 0.00390625, %v2631_v34 }
 0x182   :  { %v1327_v50 = vrot.slane %v728_v29, %v2652_v17 }
 0x183   :  { %v599_v38 = vpop.xlane.xlu1 %598  ;;  %v1243_v59 = vrot.slane %v711_v23, %v2648_v55 }
 0x184   :  { %v2634_v19 = vpop.xlane.xlu0 %564  ;;  %v760_v22 = vmul.f32 0.00390625, %v599_v38  ;;  %v2692_v38 = vsel %vm1067_vm10, %v1549_v51, %v2617_v18  ;;  %v1638_v18 = vrot.slane %v791_v44, %v2648_v55  ;;  %v1328_v47 = vsel %vm1088_vm13, %v1327_v50, %v1323_v49 }
 0x185   :  { %v743_v16 = vmul.f32 0.00390625, %v2634_v19 }
 0x186   :  { %v1485_v37 = vrot.slane %v760_v22, %v2652_v17  ;;  %v1639_v2 = vsel %vm1081_vm12, %v1638_v18, %v1634_v60  ;;  %v1239_v60 = vsel %vm1074_vm11, %v1238_v13, %v2674_v6 }
 0x187   :  { %v663_v57 = vpop.xlane.xlu1 %662  ;;  %v1401_v24 = vrot.slane %v743_v16, %v2648_v55 }
 0x188   :  { %v2641_v40 = vpop.xlane.xlu0 %628  ;;  %v792_v58 = vmul.f32 0.00390625, %v663_v57  ;;  %v742_v57 = vmul.f32 0.00390625, %v2625_v31  ;;  %v1486_v56 = vsel %vm1088_vm13, %v1485_v37, %v1481_v39 }
 0x189   :  { %v775_v7 = vmul.f32 0.00390625, %v2641_v40 }
 0x18a   :  { %v1643_v43 = vrot.slane %v792_v58, %v2652_v17  ;;  %v1396_v40 = vrot.slane %v742_v57, %v2637_v45 }
 0x18b   :  { %v473_v27 = vpop.xlane.xlu1 %472  ;;  %v1559_v44 = vrot.slane %v775_v7, %v2648_v55 }
 0x18c   :  { %v2659_v10 = vpop.xlane.xlu0 %438  ;;  %v697_v28 = vmul.f32 0.00390625, %v473_v27  ;;  %v1644_v34 = vsel %vm1088_vm13, %v1643_v43, %v1639_v2 }
 0x18d   :  { %v680_v1 = vmul.f32 0.00390625, %v2659_v10  ;;  %v1075_v10 = vsel %vm1074_vm11, %v1073_v21, %v2621_v4 }
 0x18e   :  { %v1174_v14 = vrot.slane %v697_v28, %v2657_v8  ;;  %v1554_v28 = vrot.slane %v774_v33, %v2637_v45 }
 0x18f   :  { %v537_v25 = vpop.xlane.xlu1 %536  ;;  %v1087_v37 = vrot.slane %v680_v1, %v2652_v17 }
 0x190   :  { %v503_v9 = vpop.xlane.xlu0 %502  ;;  %v729_v63 = vmul.f32 0.00390625, %v537_v25  ;;  %v1175_v31 = vsel %vm1095_vm14, %v1174_v14, %v1170_v0  ;;  %v1397_v14 = vsel %vm1074_vm11, %v1396_v40, %v2686_v32  ;;  %v1555_v6 = vsel %vm1074_vm11, %v1554_v28, %v2692_v38 }
 0x191   :  { %v712_v51 = vmul.f32 0.00390625, %v503_v9  ;;  %v1080_v9 = vrot.slane %v679_v36, %v2648_v55  ;;  %v1560_v13 = vsel %vm1081_vm12, %v1559_v44, %v1555_v6  ;;  %v1402_v18 = vsel %vm1081_vm12, %v1401_v24, %v1397_v14 }
 0x192   :  { %v1332_v27 = vrot.slane %v729_v63, %v2657_v8 }
 0x193   :  { %v601_v41 = vpop.xlane.xlu1 %600  ;;  %v1248_v45 = vrot.slane %v712_v51, %v2652_v17 }
 0x194   :  { %v761_v53 = vmul.f32 0.00390625, %v601_v41  ;;  %v567_v46 = vpop.xlane.xlu0 %566  ;;  %v1333_v26 = vsel %vm1095_vm14, %v1332_v27, %v1328_v47 }
 0x195   :  { %v744_v22 = vmul.f32 0.00390625, %v567_v46  ;;  %v1244_v46 = vsel %vm1081_vm12, %v1243_v59, %v1239_v60 }
 0x196   :  { %v1490_v35 = vrot.slane %v761_v53, %v2657_v8  ;;  %v1082_v53 = vsel %vm1081_vm12, %v1080_v9, %v1075_v10  ;;  %v1249_v32 = vsel %vm1088_vm13, %v1248_v45, %v1244_v46 }
 0x197   :  { %v665_v42 = vpop.xlane.xlu1 %664  ;;  %v1406_v4 = vrot.slane %v744_v22, %v2652_v17  ;;  %v1089_v38 = vsel %vm1088_vm13, %v1087_v37, %v1082_v53 }
 0x198   :  { %v793_v3 = vmul.f32 0.00390625, %v665_v42  ;;  %v631_v62 = vpop.xlane.xlu0 %630  ;;  %v1491_v12 = vsel %vm1095_vm14, %v1490_v35, %v1486_v56 }
 0x199   :  { %v1652_v11 = vsel %vm1650_vm15, %v1491_v12, %v1175_v31  ;;  %v776_v20 = vmul.f32 0.00390625, %v631_v62  ;;  %v1407_v57 = vsel %vm1088_vm13, %v1406_v4, %v1402_v18 }
 0x19a   :  { %v1648_v30 = vrot.slane %v793_v3, %v2657_v8  ;;  %1723 = vmatprep.mubr.f32.mxu0 %v1652_v11 }
 0x19b   :  { %v505_v48 = vpop.xlane.xlu1 %504  ;;  %v1564_v29 = vrot.slane %v776_v20, %v2652_v17 }
 0x19c   :  { %v713_v25 = vmul.f32 0.00390625, %v505_v48  ;;  %v441_v54 = vpop.xlane.xlu0 %440  ;;  %v1649_v19 = vsel %vm1095_vm14, %v1648_v30, %v1644_v34 }
 0x19d   :  { %v681_v15 = vmul.f32 0.00390625, %v441_v54  ;;  %v1654_v61 = vsel %vm1650_vm15, %v1649_v19, %v1333_v26  ;;  %v1565_v49 = vsel %vm1088_vm13, %v1564_v29, %v1560_v13 }
 0x19e   :  { %1793 = vmatprep.mubr.f32.mxu1 %v1654_v61  ;;  %v1253_v58 = vrot.slane %v713_v25, %v2657_v8 }
 0x19f   :  { %v633_v52 = vpop.xlane.xlu1 %632  ;;  %v1094_v55 = vrot.slane %v681_v15, %v2657_v8 }
 0x1a0   :  { %v777_v41 = vmul.f32 0.00390625, %v633_v52  ;;  %v569_v21 = vpop.xlane.xlu0 %568  ;;  %v1254_v50 = vsel %vm1095_vm14, %v1253_v58, %v1249_v32 }
 0x1a1   :  { %v745_v63 = vmul.f32 0.00390625, %v569_v21  ;;  %v1096_v39 = vsel %vm1095_vm14, %v1094_v55, %v1089_v38 }
 0x1a2   :  { %v1569_v17 = vrot.slane %v777_v41, %v2657_v8 }
 0x1a3   :  { %v1411_v5 = vrot.slane %v745_v63, %v2657_v8 }
 0x1a4   :  { %v1570_v35 = vsel %vm1095_vm14, %v1569_v17, %v1565_v49 }
 0x1a5   :  { %v1412_v33 = vsel %vm1095_vm14, %v1411_v5, %v1407_v57  ;;  %v1653_v43 = vsel %vm1650_vm15, %v1570_v35, %v1254_v50 }
 0x1a6   :  { %v1651_v8 = vsel %vm1650_vm15, %v1412_v33, %v1096_v39  ;;  %1794 = vmatmul.mubr.f32.vlgmr.msra.gmra.mrb[0].mxu1 %v1653_v43 }
 0x1a7   :  { %1724 = vmatmul.mubr.f32.vlgmr.msra.gmra.mrb[0].mxu0 %v1651_v8 }
 0x279   :  { %v1883_v42 = vpop.f32.mrb[0].mxu1 }
 0x27a   :  { %v1848_v0 = vpop.f32.mrb[0].mxu0  ;;  %v1884_v56 = vpop.f32.mrb[1].mxu1 }
 0x27b   :  { %v1849_v27 = vpop.f32.mrb[1].mxu0  ;;  %v1885_v3 = vadd.f32 %v1884_v56, %v1883_v42 }
 0x27c   :  { %v1850_v62 = vadd.f32 %v1849_v27, %v1848_v0 }
 0x27e   :  { %v1796_v31 = vadd.f32 %v1885_v3, %v1850_v62 }
 0x280   :  { %1800 = vst.msk [vmem:[#allocation5] sm:$0x3] %vm1799_vm0, %v1796_v31 }
 0x281   :  { %1987 = shalt.err (!%p1984_p12)
}
 0x282   :  { %s1988_s10 = scalar_lea.hbm %s2778_s2, 32 }
 0x283   :  { %p1989_p13 = scmp.ne.s32.totalorder %s2778_s2, %s1988_s10  ;;  %p1992_p0 = scmp.lt.u32.totalorder %s1988_s10, %s2778_s2 }
 0x285   :  { %p1994_p1 = pnand %p1992_p0, %p1989_p13 }
 0x287   :  { %1997 = shalt.err (!%p1994_p1)
}
 0x288   :  { %1810 = dma.vmem_to_hbm [thread:$0]  %s1808_s6, 32, %s2778_s2, [#allocation4]  }
 0x289   :  { %2000 = dma.done.wait [#allocation4], 32  }
 0x28a   :  { %2001 = vsyncadd [#allocation4], 4294967264 }
 0x28b   :  { %1814 = vsyncpa [#allocation3], 1 }
 0x28c   :  { %1815 = vsyncpa [#allocation4], 1 }

</bundles_post_ra>
